<compile_context>
chip_gen: v7x
topology: tpu7x:2x2x1
jax: 0.10.0
libtpu: 0.0.40
codegen_flags: <defaults>
</compile_context>

<pallas_src>
import functools

import jax
import jax.numpy as jnp
from jax.experimental import pallas as pl
from jax.experimental.pallas import tpu as pltpu


def _round_up(x, m):
    return (x + m - 1) // m * m


# ----------------------------- Pallas kernel --------------------------------
def _detect_level_kernel(x_ref, w_ref, c_ref, *out_refs, nx, ny, emit_raw):
    """One (tm, cpad) tile of fused 1x1-conv + sigmoid + box decode.

    x_ref : (tm, cin)        bf16 activations (rows = flattened (b, y, x) pixels)
    w_ref : (cin, cpad)      bf16 conv weight (zero-padded lanes if cpad>cout)
    c_ref : (8, cpad)        f32 per-output-channel constants:
              row 0 = bias
              row 1 = a1   linear coef    (2*stride for xy, 1 for conf/cls, 0 for wh)
              row 2 = a2   quadratic coef (4*anchor for wh, else 0)
              row 3 = cgx  grid-x coef    (stride for o==0, else 0)
              row 4 = cgy  grid-y coef    (stride for o==1, else 0)
              row 5 = add  additive term  (-0.5*stride for xy, else 0)
    out_refs: optionally (raw_ref bf16, z_ref f32) or just (z_ref,).
    """
    c = c_ref[...]
    bias, a1, a2 = c[0:1, :], c[1:2, :], c[2:3, :]
    cgx, cgy, add = c[3:4, :], c[4:5, :], c[5:6, :]

    # 1x1 conv == channel matmul on the MXU (bf16 operands, f32 accumulate).
    raw = jnp.dot(x_ref[...], w_ref[...], preferred_element_type=jnp.float32) + bias
    if emit_raw:
        out_refs[0][...] = raw.astype(out_refs[0].dtype)   # bf16 store (half bytes)

    y = jax.nn.sigmoid(raw)

    # In-kernel grid coordinates as (tm, 1) columns (NOT full-tile) —
    # global row r = (b*ny + gy)*nx + gx.  Float reciprocal-mul + floor with a
    # 0.5/div guard: all values are exact small integers in f32 and any true
    # fractional part is >= 1/div, so floor is immune to the rounding error.
    tm = raw.shape[0]
    hw = float(nx * ny)
    fnx = float(nx)
    rows = (jax.lax.broadcasted_iota(jnp.int32, (tm, 1), 0)
            + pl.program_id(0) * tm).astype(jnp.float32)
    pix = rows - jnp.floor(rows * (1.0 / hw) + 0.5 / hw) * hw   # r % (nx*ny)
    gy = jnp.floor(pix * (1.0 / fnx) + 0.5 / fnx)               # pix // nx
    gx = pix - gy * fnx                                         # pix %  nx

    # Fused decode:
    #   xy channels: (2*sigmoid - 0.5 + grid) * stride
    #   wh channels: (2*sigmoid)^2 * anchor
    #   rest       : sigmoid
    z_ref = out_refs[-1]
    z_ref[...] = a1 * y + a2 * (y * y) + (gx * cgx + gy * cgy + add)


# ------------------------- per-level constants -------------------------------
def _level_constants(bias, anchors_l, stride, na, no, cpad):
    cout = na * no
    o_idx = jnp.tile(jnp.arange(no), (na,))
    a_idx = jnp.repeat(jnp.arange(na), no)
    is_xy = (o_idx < 2).astype(jnp.float32)
    is_wh = ((o_idx >= 2) & (o_idx < 4)).astype(jnp.float32)
    a1 = 2.0 * stride * is_xy + (1.0 - is_xy - is_wh)
    anc = anchors_l[a_idx, jnp.clip(o_idx - 2, 0, 1)]
    a2 = 4.0 * anc * is_wh
    cgx = stride * (o_idx == 0).astype(jnp.float32)
    cgy = stride * (o_idx == 1).astype(jnp.float32)
    add = (-0.5 * stride) * is_xy
    rows = jnp.stack([bias.astype(jnp.float32), a1, a2, cgx, cgy, add], axis=0)
    return jnp.pad(rows, ((0, 8 - rows.shape[0]), (0, cpad - cout)))


# --------------------------- chip-aware tile policy ---------------------------
def _tile_policy():
    """Returns (tm_cap, min_programs) for the local TPU generation."""
    try:
        kind = jax.devices()[0].device_kind.lower()
    except Exception:  # pragma: no cover - fallback if device query fails
        kind = ""
    if "v7" in kind:
        # 64 MiB VMEM, 2 TensorCores share the "parallel" grid axis.
        return 512, 2
    # v5e/v6e: 128 MiB VMEM, single TC -> bigger tiles amortize ~0.35us/step.
    return 1024, 1


# ------------------------- per-level wrapper (glue) ---------------------------
def detect_level(x_in, w, b, anchors_l, stride, na, no, *,
                 emit_raw=True, raw_dtype=jnp.bfloat16,
                 pad_out_lanes=True, nhwc=False):
    if nhwc:
        bs, ny, nx, cin = x_in.shape
        x_flat = x_in.reshape(bs * ny * nx, cin)
    else:
        bs, cin, ny, nx = x_in.shape
        # TODO(synk): feed NHWC straight from the backbone (nhwc=True) to drop
        # this full-tensor HBM round trip (kept for the PyTorch NCHW interface).
        x_flat = jnp.transpose(x_in, (0, 2, 3, 1)).reshape(bs * ny * nx, cin)

    cout = na * no
    # Lane-dense padded stores by default; pad_out_lanes=False writes the raw
    # (tm, cout) width via masked stores — fewer HBM bytes for small nc.
    cpad = _round_up(cout, 128) if pad_out_lanes else cout
    P = bs * ny * nx
    # f32 floor-mod grid trick needs exact-integer rows / products.
    assert P < (1 << 22), "grid-coordinate trick requires bs*ny*nx < 2^22"

    tm_cap, min_programs = _tile_policy()
    if min_programs >= 2:
        tm = min(tm_cap, max(8, _round_up(-(-P // 2), 8)))   # >=2 programs when possible
    else:
        tm = min(tm_cap, _round_up(P, 8))
    P_pad = _round_up(P, tm)
    if P_pad != P:
        x_flat = jnp.pad(x_flat, ((0, P_pad - P), (0, 0)))
    x_flat = x_flat.astype(jnp.bfloat16)

    w_pad = jnp.pad(w, ((0, 0), (0, cpad - cout))).astype(jnp.bfloat16)
    consts = _level_constants(b, anchors_l, stride, na, no, cpad)

    kern = functools.partial(_detect_level_kernel, nx=nx, ny=ny, emit_raw=emit_raw)

    out_shapes, out_specs = [], []
    if emit_raw:
        out_shapes.append(jax.ShapeDtypeStruct((P_pad, cpad), raw_dtype))
        out_specs.append(pl.BlockSpec((tm, cpad), lambda i: (i, 0)))
    out_shapes.append(jax.ShapeDtypeStruct((P_pad, cpad), jnp.float32))
    out_specs.append(pl.BlockSpec((tm, cpad), lambda i: (i, 0)))

    outs = pl.pallas_call(
        kern,
        out_shape=tuple(out_shapes),
        grid=(P_pad // tm,),
        in_specs=[
            pl.BlockSpec((tm, cin), lambda i: (i, 0)),     # activations
            pl.BlockSpec((cin, cpad), lambda i: (0, 0)),   # conv weight
            pl.BlockSpec((8, cpad), lambda i: (0, 0)),     # fused constants
        ],
        out_specs=tuple(out_specs),
        compiler_params=pltpu.CompilerParams(dimension_semantics=("parallel",)),
    )(x_flat, w_pad, consts)

    z = outs[-1][:P, :cout]
    # back to PyTorch layouts: x -> (bs,na,ny,nx,no), z -> (bs, na*ny*nx, no)
    z_out = (z.reshape(bs, ny, nx, na, no).transpose(0, 3, 1, 2, 4)
              .reshape(bs, na * ny * nx, no))
    if not emit_raw:
        return None, z_out

    raw = outs[0][:P, :cout]
    # TODO(synk): downstream consumer of the `x` list must tolerate bf16 raw
    # logits (intentional bandwidth optimization); cast here if not.
    x_out = raw.reshape(bs, ny, nx, na, no).transpose(0, 3, 1, 2, 4)
    return x_out, z_out


@functools.partial(jax.jit,
                   static_argnames=("strides", "nc", "return_raw", "pad_out_lanes"))
def detect_forward(xs, weights, biases, anchors, strides, nc,
                   return_raw=True, pad_out_lanes=True):
    na = anchors.shape[1]
    no = nc + 5
    x_list, z_list = [], []
    for i in range(len(xs)):
        xo, zo = detect_level(xs[i], weights[i], biases[i], anchors[i],
                              strides[i], na, no,
                              emit_raw=return_raw, pad_out_lanes=pad_out_lanes)
        x_list.append(xo)
        z_list.append(zo)
    z_cat = jnp.concatenate(z_list, axis=1)
    if not return_raw:
        return z_cat                      # matches the concat/end2end branch
    return z_cat, tuple(x_list)           # default branch: (cat(z,1), x)


# ------------------------------ pure-JAX reference ---------------------------
def _ref_level(x_nchw, w, b, anchors_l, stride, na, no):
    bs, cin, ny, nx = x_nchw.shape
    xh = jnp.transpose(x_nchw, (0, 2, 3, 1)).astype(jnp.bfloat16)
    raw = jnp.einsum("bhwc,cd->bhwd", xh, w.astype(jnp.bfloat16),
                     preferred_element_type=jnp.float32) + b
    xperm = raw.reshape(bs, ny, nx, na, no).transpose(0, 3, 1, 2, 4)
    y = jax.nn.sigmoid(xperm)
    yv, xv = jnp.meshgrid(jnp.arange(ny, dtype=jnp.float32),
                          jnp.arange(nx, dtype=jnp.float32), indexing="ij")
    grid = jnp.stack((xv, yv), -1).reshape(1, 1, ny, nx, 2)
    xy = (y[..., 0:2] * 2.0 - 0.5 + grid) * stride
    wh = (y[..., 2:4] * 2.0) ** 2 * anchors_l.reshape(1, na, 1, 1, 2)
    yd = jnp.concatenate([xy, wh, y[..., 4:]], axis=-1)
    return xperm, yd.reshape(bs, -1, no)


# ---------------------------------- main -------------------------------------
if __name__ == "__main__":
    nc = 3                      # small class count -> no = 8
    no = nc + 5
    anchors_py = ((10, 13, 16, 30, 33, 23),
                  (30, 61, 62, 45, 59, 119),
                  (116, 90, 156, 198, 373, 326))
    nl = len(anchors_py)
    na = len(anchors_py[0]) // 2
    anchors = jnp.asarray(anchors_py, dtype=jnp.float32).reshape(nl, na, 2)
    strides = (8.0, 16.0, 32.0)
    ch = (8, 16, 32)
    bs = 2
    spatial = [(8, 8), (4, 4), (2, 2)]

    key = jax.random.PRNGKey(0)
    weights, biases, xs = [], [], []
    for i in range(nl):
        key, kw, kb, kx = jax.random.split(key, 4)
        weights.append(0.05 * jax.random.normal(kw, (ch[i], na * no), jnp.float32))
        biases.append(0.01 * jax.random.normal(kb, (na * no,), jnp.float32))
        ny, nx = spatial[i]
        xs.append(jax.random.normal(kx, (bs, ch[i], ny, nx), jnp.float32))

    # default path: (cat(z,1), x) with lane-dense padded stores, bf16 raw
    z_cat, x_out = detect_forward(tuple(xs), tuple(weights), tuple(biases),
                                  anchors, strides, nc)
    jax.block_until_ready(z_cat)
    jax.block_until_ready(x_out)

    # inference-only path: skip raw output stream, unpadded masked z stores
    z_only = detect_forward(tuple(xs), tuple(weights), tuple(biases),
                            anchors, strides, nc,
                            return_raw=False, pad_out_lanes=False)
    jax.block_until_ready(z_only)

    # correctness check vs pure-JAX reference (same bf16 matmul operands)
    z_refs, x_refs = [], []
    for i in range(nl):
        xr, zr = _ref_level(xs[i], weights[i], biases[i], anchors[i],
                            strides[i], na, no)
        x_refs.append(xr)
        z_refs.append(zr)
    z_ref_cat = jnp.concatenate(z_refs, axis=1)

    assert z_cat.shape == (bs, na * sum(h * w for h, w in spatial), no)
    assert jnp.allclose(z_cat, z_ref_cat, atol=3e-3, rtol=3e-3), (
        float(jnp.max(jnp.abs(z_cat - z_ref_cat))))
    assert jnp.allclose(z_only, z_ref_cat, atol=3e-3, rtol=3e-3), (
        float(jnp.max(jnp.abs(z_only - z_ref_cat))))
    for xo, xr in zip(x_out, x_refs):
        # raw is intentionally bf16 now -> looser tolerance vs f32 reference
        assert xo.dtype == jnp.bfloat16
        assert jnp.allclose(xo.astype(jnp.float32), xr, atol=2e-2, rtol=2e-2), (
            float(jnp.max(jnp.abs(xo.astype(jnp.float32) - xr))))

    print("KERNEL_OK")
</pallas_src>

<mosaic_0001>
module attributes {stable_mosaic.version = 11 : i64} {
  func.func @_detect_level_kernel(%arg0: i32, %arg1: memref<128x8xbf16, #tpu.memory_space<vmem>>, %arg2: memref<8x128xbf16, #tpu.memory_space<vmem>>, %arg3: memref<8x128xf32, #tpu.memory_space<vmem>>, %arg4: memref<128x128xbf16, #tpu.memory_space<vmem>>, %arg5: memref<128x128xf32, #tpu.memory_space<vmem>>) attributes {dimension_semantics = [#tpu.dimension_semantics<parallel>], iteration_bounds = array<i64: 1>, scalar_prefetch = 0 : i64, scratch_operands = 0 : i64, tpu.core_type = #tpu.core_type<tc>, window_params = [{transform_indices = @transform_0, window_bounds = array<i64: 128, 8>}, {pipeline_mode = #tpu.pipeline_mode<synchronous>, transform_indices = @transform_1, window_bounds = array<i64: 8, 128>}, {pipeline_mode = #tpu.pipeline_mode<synchronous>, transform_indices = @transform_2, window_bounds = array<i64: 8, 128>}, {transform_indices = @transform_3, window_bounds = array<i64: 128, 128>}, {transform_indices = @transform_4, window_bounds = array<i64: 128, 128>}]} {
    %c0 = arith.constant 0 : index
    %c0_0 = arith.constant 0 : index
    %0 = vector.load %arg3[%c0, %c0_0] : memref<8x128xf32, #tpu.memory_space<vmem>>, vector<8x128xf32>
    %1 = vector.extract_strided_slice %0 {offsets = [0, 0], sizes = [1, 128], strides = [1, 1]} : vector<8x128xf32> to vector<1x128xf32>
    %2 = vector.extract_strided_slice %0 {offsets = [1, 0], sizes = [1, 128], strides = [1, 1]} : vector<8x128xf32> to vector<1x128xf32>
    %3 = vector.extract_strided_slice %0 {offsets = [2, 0], sizes = [1, 128], strides = [1, 1]} : vector<8x128xf32> to vector<1x128xf32>
    %4 = vector.extract_strided_slice %0 {offsets = [3, 0], sizes = [1, 128], strides = [1, 1]} : vector<8x128xf32> to vector<1x128xf32>
    %5 = vector.extract_strided_slice %0 {offsets = [4, 0], sizes = [1, 128], strides = [1, 1]} : vector<8x128xf32> to vector<1x128xf32>
    %6 = vector.extract_strided_slice %0 {offsets = [5, 0], sizes = [1, 128], strides = [1, 1]} : vector<8x128xf32> to vector<1x128xf32>
    %c0_1 = arith.constant 0 : index
    %c0_2 = arith.constant 0 : index
    %7 = vector.load %arg1[%c0_1, %c0_2] : memref<128x8xbf16, #tpu.memory_space<vmem>>, vector<128x8xbf16>
    %c0_3 = arith.constant 0 : index
    %c0_4 = arith.constant 0 : index
    %8 = vector.load %arg2[%c0_3, %c0_4] : memref<8x128xbf16, #tpu.memory_space<vmem>>, vector<8x128xbf16>
    %cst = arith.constant dense<0.000000e+00> : vector<128x128xf32>
    %9 = tpu.matmul %7, %8, %cst {dimension_numbers = #tpu.dot_dimension_numbers<[1], [0], [0], [1], [0, 0, 1, 1], [], []>} : vector<128x8xbf16>, vector<8x128xbf16>, vector<128x128xf32> -> vector<128x128xf32>
    %10 = vector.broadcast %1 : vector<1x128xf32> to vector<128x128xf32>
    %11 = arith.addf %9, %10 : vector<128x128xf32>
    %12 = arith.truncf %11 : vector<128x128xf32> to vector<128x128xbf16>
    %c0_5 = arith.constant 0 : index
    %c0_6 = arith.constant 0 : index
    %13 = vector.load %arg4[%c0_5, %c0_6] : memref<128x128xbf16, #tpu.memory_space<vmem>>, vector<128x128xbf16>
    tpu.vector_store %arg4[%c0_5, %c0_6], %12 {strides = array<i32>} : memref<128x128xbf16, #tpu.memory_space<vmem>>, vector<128x128xbf16>,
    %14 = arith.negf %11 : vector<128x128xf32>
    %15 = math.exp %14 : vector<128x128xf32>
    %cst_7 = arith.constant 1.000000e+00 : f32
    %16 = vector.broadcast %cst_7 : f32 to vector<128x128xf32>
    %17 = arith.addf %16, %15 : vector<128x128xf32>
    %18 = arith.divf %16, %17 : vector<128x128xf32>
    %19 = tpu.iota {dimensions = array<i32: 0>} : vector<128x1xi32>
    %c128_i32 = arith.constant 128 : i32
    %20 = arith.muli %arg0, %c128_i32 : i32
    %21 = vector.broadcast %20 : i32 to vector<128x1xi32>
    %22 = arith.addi %19, %21 : vector<128x1xi32>
    %23 = arith.sitofp %22 : vector<128x1xi32> to vector<128x1xf32>
    %cst_8 = arith.constant 1.562500e-02 : f32
    %24 = vector.broadcast %cst_8 : f32 to vector<128x1xf32>
    %25 = arith.mulf %23, %24 : vector<128x1xf32>
    %cst_9 = arith.constant 7.812500e-03 : f32
    %26 = vector.broadcast %cst_9 : f32 to vector<128x1xf32>
    %27 = arith.addf %25, %26 : vector<128x1xf32>
    %28 = math.floor %27 : vector<128x1xf32>
    %cst_10 = arith.constant 6.400000e+01 : f32
    %29 = vector.broadcast %cst_10 : f32 to vector<128x1xf32>
    %30 = arith.mulf %28, %29 : vector<128x1xf32>
    %31 = arith.subf %23, %30 : vector<128x1xf32>
    %cst_11 = arith.constant 1.250000e-01 : f32
    %32 = vector.broadcast %cst_11 : f32 to vector<128x1xf32>
    %33 = arith.mulf %31, %32 : vector<128x1xf32>
    %cst_12 = arith.constant 6.250000e-02 : f32
    %34 = vector.broadcast %cst_12 : f32 to vector<128x1xf32>
    %35 = arith.addf %33, %34 : vector<128x1xf32>
    %36 = math.floor %35 : vector<128x1xf32>
    %cst_13 = arith.constant 8.000000e+00 : f32
    %37 = vector.broadcast %cst_13 : f32 to vector<128x1xf32>
    %38 = arith.mulf %36, %37 : vector<128x1xf32>
    %39 = arith.subf %31, %38 : vector<128x1xf32>
    %40 = vector.broadcast %2 : vector<1x128xf32> to vector<128x128xf32>
    %41 = arith.mulf %40, %18 : vector<128x128xf32>
    %42 = arith.mulf %18, %18 : vector<128x128xf32>
    %43 = vector.broadcast %3 : vector<1x128xf32> to vector<128x128xf32>
    %44 = arith.mulf %43, %42 : vector<128x128xf32>
    %45 = arith.addf %41, %44 : vector<128x128xf32>
    %46 = vector.broadcast %39 : vector<128x1xf32> to vector<128x128xf32>
    %47 = vector.broadcast %4 : vector<1x128xf32> to vector<128x128xf32>
    %48 = arith.mulf %46, %47 : vector<128x128xf32>
    %49 = vector.broadcast %36 : vector<128x1xf32> to vector<128x128xf32>
    %50 = vector.broadcast %5 : vector<1x128xf32> to vector<128x128xf32>
    %51 = arith.mulf %49, %50 : vector<128x128xf32>
    %52 = arith.addf %48, %51 : vector<128x128xf32>
    %53 = vector.broadcast %6 : vector<1x128xf32> to vector<128x128xf32>
    %54 = arith.addf %52, %53 : vector<128x128xf32>
    %55 = arith.addf %45, %54 : vector<128x128xf32>
    %c0_14 = arith.constant 0 : index
    %c0_15 = arith.constant 0 : index
    %56 = vector.load %arg5[%c0_14, %c0_15] : memref<128x128xf32, #tpu.memory_space<vmem>>, vector<128x128xf32>
    tpu.vector_store %arg5[%c0_14, %c0_15], %55 {strides = array<i32>} : memref<128x128xf32, #tpu.memory_space<vmem>>, vector<128x128xf32>,
    return
  }
  func.func @transform_0(%arg0: i32) -> (i32, i32) {
    %c0_i32 = arith.constant 0 : i32
    %c0_i32_0 = arith.constant 0 : i32
    return %arg0, %c0_i32 : i32, i32
  }
  func.func @transform_1(%arg0: i32) -> (i32, i32) {
    %c0_i32 = arith.constant 0 : i32
    %c0_i32_0 = arith.constant 0 : i32
    %c0_i32_1 = arith.constant 0 : i32
    return %c0_i32, %c0_i32_0 : i32, i32
  }
  func.func @transform_2(%arg0: i32) -> (i32, i32) {
    %c0_i32 = arith.constant 0 : i32
    %c0_i32_0 = arith.constant 0 : i32
    %c0_i32_1 = arith.constant 0 : i32
    return %c0_i32, %c0_i32_0 : i32, i32
  }
  func.func @transform_3(%arg0: i32) -> (i32, i32) {
    %c0_i32 = arith.constant 0 : i32
    %c0_i32_0 = arith.constant 0 : i32
    return %arg0, %c0_i32 : i32, i32
  }
  func.func @transform_4(%arg0: i32) -> (i32, i32) {
    %c0_i32 = arith.constant 0 : i32
    %c0_i32_0 = arith.constant 0 : i32
    return %arg0, %c0_i32 : i32, i32
  }
}

module attributes {stable_mosaic.version = 11 : i64} {
  func.func @_detect_level_kernel(%arg0: i32, %arg1: memref<32x16xbf16, #tpu.memory_space<vmem>>, %arg2: memref<16x128xbf16, #tpu.memory_space<vmem>>, %arg3: memref<8x128xf32, #tpu.memory_space<vmem>>, %arg4: memref<32x128xbf16, #tpu.memory_space<vmem>>, %arg5: memref<32x128xf32, #tpu.memory_space<vmem>>) attributes {dimension_semantics = [#tpu.dimension_semantics<parallel>], iteration_bounds = array<i64: 1>, scalar_prefetch = 0 : i64, scratch_operands = 0 : i64, tpu.core_type = #tpu.core_type<tc>, window_params = [{transform_indices = @transform_0, window_bounds = array<i64: 32, 16>}, {pipeline_mode = #tpu.pipeline_mode<synchronous>, transform_indices = @transform_1, window_bounds = array<i64: 16, 128>}, {pipeline_mode = #tpu.pipeline_mode<synchronous>, transform_indices = @transform_2, window_bounds = array<i64: 8, 128>}, {transform_indices = @transform_3, window_bounds = array<i64: 32, 128>}, {transform_indices = @transform_4, window_bounds = array<i64: 32, 128>}]} {
    %c0 = arith.constant 0 : index
    %c0_0 = arith.constant 0 : index
    %0 = vector.load %arg3[%c0, %c0_0] : memref<8x128xf32, #tpu.memory_space<vmem>>, vector<8x128xf32>
    %1 = vector.extract_strided_slice %0 {offsets = [0, 0], sizes = [1, 128], strides = [1, 1]} : vector<8x128xf32> to vector<1x128xf32>
    %2 = vector.extract_strided_slice %0 {offsets = [1, 0], sizes = [1, 128], strides = [1, 1]} : vector<8x128xf32> to vector<1x128xf32>
    %3 = vector.extract_strided_slice %0 {offsets = [2, 0], sizes = [1, 128], strides = [1, 1]} : vector<8x128xf32> to vector<1x128xf32>
    %4 = vector.extract_strided_slice %0 {offsets = [3, 0], sizes = [1, 128], strides = [1, 1]} : vector<8x128xf32> to vector<1x128xf32>
    %5 = vector.extract_strided_slice %0 {offsets = [4, 0], sizes = [1, 128], strides = [1, 1]} : vector<8x128xf32> to vector<1x128xf32>
    %6 = vector.extract_strided_slice %0 {offsets = [5, 0], sizes = [1, 128], strides = [1, 1]} : vector<8x128xf32> to vector<1x128xf32>
    %c0_1 = arith.constant 0 : index
    %c0_2 = arith.constant 0 : index
    %7 = vector.load %arg1[%c0_1, %c0_2] : memref<32x16xbf16, #tpu.memory_space<vmem>>, vector<32x16xbf16>
    %c0_3 = arith.constant 0 : index
    %c0_4 = arith.constant 0 : index
    %8 = vector.load %arg2[%c0_3, %c0_4] : memref<16x128xbf16, #tpu.memory_space<vmem>>, vector<16x128xbf16>
    %cst = arith.constant dense<0.000000e+00> : vector<32x128xf32>
    %9 = tpu.matmul %7, %8, %cst {dimension_numbers = #tpu.dot_dimension_numbers<[1], [0], [0], [1], [0, 0, 1, 1], [], []>} : vector<32x16xbf16>, vector<16x128xbf16>, vector<32x128xf32> -> vector<32x128xf32>
    %10 = vector.broadcast %1 : vector<1x128xf32> to vector<32x128xf32>
    %11 = arith.addf %9, %10 : vector<32x128xf32>
    %12 = arith.truncf %11 : vector<32x128xf32> to vector<32x128xbf16>
    %c0_5 = arith.constant 0 : index
    %c0_6 = arith.constant 0 : index
    %13 = vector.load %arg4[%c0_5, %c0_6] : memref<32x128xbf16, #tpu.memory_space<vmem>>, vector<32x128xbf16>
    tpu.vector_store %arg4[%c0_5, %c0_6], %12 {strides = array<i32>} : memref<32x128xbf16, #tpu.memory_space<vmem>>, vector<32x128xbf16>,
    %14 = arith.negf %11 : vector<32x128xf32>
    %15 = math.exp %14 : vector<32x128xf32>
    %cst_7 = arith.constant 1.000000e+00 : f32
    %16 = vector.broadcast %cst_7 : f32 to vector<32x128xf32>
    %17 = arith.addf %16, %15 : vector<32x128xf32>
    %18 = arith.divf %16, %17 : vector<32x128xf32>
    %19 = tpu.iota {dimensions = array<i32: 0>} : vector<32x1xi32>
    %c32_i32 = arith.constant 32 : i32
    %20 = arith.muli %arg0, %c32_i32 : i32
    %21 = vector.broadcast %20 : i32 to vector<32x1xi32>
    %22 = arith.addi %19, %21 : vector<32x1xi32>
    %23 = arith.sitofp %22 : vector<32x1xi32> to vector<32x1xf32>
    %cst_8 = arith.constant 6.250000e-02 : f32
    %24 = vector.broadcast %cst_8 : f32 to vector<32x1xf32>
    %25 = arith.mulf %23, %24 : vector<32x1xf32>
    %cst_9 = arith.constant 3.125000e-02 : f32
    %26 = vector.broadcast %cst_9 : f32 to vector<32x1xf32>
    %27 = arith.addf %25, %26 : vector<32x1xf32>
    %28 = math.floor %27 : vector<32x1xf32>
    %cst_10 = arith.constant 1.600000e+01 : f32
    %29 = vector.broadcast %cst_10 : f32 to vector<32x1xf32>
    %30 = arith.mulf %28, %29 : vector<32x1xf32>
    %31 = arith.subf %23, %30 : vector<32x1xf32>
    %cst_11 = arith.constant 2.500000e-01 : f32
    %32 = vector.broadcast %cst_11 : f32 to vector<32x1xf32>
    %33 = arith.mulf %31, %32 : vector<32x1xf32>
    %cst_12 = arith.constant 1.250000e-01 : f32
    %34 = vector.broadcast %cst_12 : f32 to vector<32x1xf32>
    %35 = arith.addf %33, %34 : vector<32x1xf32>
    %36 = math.floor %35 : vector<32x1xf32>
    %cst_13 = arith.constant 4.000000e+00 : f32
    %37 = vector.broadcast %cst_13 : f32 to vector<32x1xf32>
    %38 = arith.mulf %36, %37 : vector<32x1xf32>
    %39 = arith.subf %31, %38 : vector<32x1xf32>
    %40 = vector.broadcast %2 : vector<1x128xf32> to vector<32x128xf32>
    %41 = arith.mulf %40, %18 : vector<32x128xf32>
    %42 = arith.mulf %18, %18 : vector<32x128xf32>
    %43 = vector.broadcast %3 : vector<1x128xf32> to vector<32x128xf32>
    %44 = arith.mulf %43, %42 : vector<32x128xf32>
    %45 = arith.addf %41, %44 : vector<32x128xf32>
    %46 = vector.broadcast %39 : vector<32x1xf32> to vector<32x128xf32>
    %47 = vector.broadcast %4 : vector<1x128xf32> to vector<32x128xf32>
    %48 = arith.mulf %46, %47 : vector<32x128xf32>
    %49 = vector.broadcast %36 : vector<32x1xf32> to vector<32x128xf32>
    %50 = vector.broadcast %5 : vector<1x128xf32> to vector<32x128xf32>
    %51 = arith.mulf %49, %50 : vector<32x128xf32>
    %52 = arith.addf %48, %51 : vector<32x128xf32>
    %53 = vector.broadcast %6 : vector<1x128xf32> to vector<32x128xf32>
    %54 = arith.addf %52, %53 : vector<32x128xf32>
    %55 = arith.addf %45, %54 : vector<32x128xf32>
    %c0_14 = arith.constant 0 : index
    %c0_15 = arith.constant 0 : index
    %56 = vector.load %arg5[%c0_14, %c0_15] : memref<32x128xf32, #tpu.memory_space<vmem>>, vector<32x128xf32>
    tpu.vector_store %arg5[%c0_14, %c0_15], %55 {strides = array<i32>} : memref<32x128xf32, #tpu.memory_space<vmem>>, vector<32x128xf32>,
    return
  }
  func.func @transform_0(%arg0: i32) -> (i32, i32) {
    %c0_i32 = arith.constant 0 : i32
    %c0_i32_0 = arith.constant 0 : i32
    return %arg0, %c0_i32 : i32, i32
  }
  func.func @transform_1(%arg0: i32) -> (i32, i32) {
    %c0_i32 = arith.constant 0 : i32
    %c0_i32_0 = arith.constant 0 : i32
    %c0_i32_1 = arith.constant 0 : i32
    return %c0_i32, %c0_i32_0 : i32, i32
  }
  func.func @transform_2(%arg0: i32) -> (i32, i32) {
    %c0_i32 = arith.constant 0 : i32
    %c0_i32_0 = arith.constant 0 : i32
    %c0_i32_1 = arith.constant 0 : i32
    return %c0_i32, %c0_i32_0 : i32, i32
  }
  func.func @transform_3(%arg0: i32) -> (i32, i32) {
    %c0_i32 = arith.constant 0 : i32
    %c0_i32_0 = arith.constant 0 : i32
    return %arg0, %c0_i32 : i32, i32
  }
  func.func @transform_4(%arg0: i32) -> (i32, i32) {
    %c0_i32 = arith.constant 0 : i32
    %c0_i32_0 = arith.constant 0 : i32
    return %arg0, %c0_i32 : i32, i32
  }
}

module attributes {stable_mosaic.version = 11 : i64} {
  func.func @_detect_level_kernel(%arg0: i32, %arg1: memref<8x32xbf16, #tpu.memory_space<vmem>>, %arg2: memref<32x128xbf16, #tpu.memory_space<vmem>>, %arg3: memref<8x128xf32, #tpu.memory_space<vmem>>, %arg4: memref<8x128xbf16, #tpu.memory_space<vmem>>, %arg5: memref<8x128xf32, #tpu.memory_space<vmem>>) attributes {dimension_semantics = [#tpu.dimension_semantics<parallel>], iteration_bounds = array<i64: 1>, scalar_prefetch = 0 : i64, scratch_operands = 0 : i64, tpu.core_type = #tpu.core_type<tc>, window_params = [{transform_indices = @transform_0, window_bounds = array<i64: 8, 32>}, {pipeline_mode = #tpu.pipeline_mode<synchronous>, transform_indices = @transform_1, window_bounds = array<i64: 32, 128>}, {pipeline_mode = #tpu.pipeline_mode<synchronous>, transform_indices = @transform_2, window_bounds = array<i64: 8, 128>}, {transform_indices = @transform_3, window_bounds = array<i64: 8, 128>}, {transform_indices = @transform_4, window_bounds = array<i64: 8, 128>}]} {
    %c0 = arith.constant 0 : index
    %c0_0 = arith.constant 0 : index
    %0 = vector.load %arg3[%c0, %c0_0] : memref<8x128xf32, #tpu.memory_space<vmem>>, vector<8x128xf32>
    %1 = vector.extract_strided_slice %0 {offsets = [0, 0], sizes = [1, 128], strides = [1, 1]} : vector<8x128xf32> to vector<1x128xf32>
    %2 = vector.extract_strided_slice %0 {offsets = [1, 0], sizes = [1, 128], strides = [1, 1]} : vector<8x128xf32> to vector<1x128xf32>
    %3 = vector.extract_strided_slice %0 {offsets = [2, 0], sizes = [1, 128], strides = [1, 1]} : vector<8x128xf32> to vector<1x128xf32>
    %4 = vector.extract_strided_slice %0 {offsets = [3, 0], sizes = [1, 128], strides = [1, 1]} : vector<8x128xf32> to vector<1x128xf32>
    %5 = vector.extract_strided_slice %0 {offsets = [4, 0], sizes = [1, 128], strides = [1, 1]} : vector<8x128xf32> to vector<1x128xf32>
    %6 = vector.extract_strided_slice %0 {offsets = [5, 0], sizes = [1, 128], strides = [1, 1]} : vector<8x128xf32> to vector<1x128xf32>
    %c0_1 = arith.constant 0 : index
    %c0_2 = arith.constant 0 : index
    %7 = vector.load %arg1[%c0_1, %c0_2] : memref<8x32xbf16, #tpu.memory_space<vmem>>, vector<8x32xbf16>
    %c0_3 = arith.constant 0 : index
    %c0_4 = arith.constant 0 : index
    %8 = vector.load %arg2[%c0_3, %c0_4] : memref<32x128xbf16, #tpu.memory_space<vmem>>, vector<32x128xbf16>
    %cst = arith.constant dense<0.000000e+00> : vector<8x128xf32>
    %9 = tpu.matmul %7, %8, %cst {dimension_numbers = #tpu.dot_dimension_numbers<[1], [0], [0], [1], [0, 0, 1, 1], [], []>} : vector<8x32xbf16>, vector<32x128xbf16>, vector<8x128xf32> -> vector<8x128xf32>
    %10 = vector.broadcast %1 : vector<1x128xf32> to vector<8x128xf32>
    %11 = arith.addf %9, %10 : vector<8x128xf32>
    %12 = arith.truncf %11 : vector<8x128xf32> to vector<8x128xbf16>
    %c0_5 = arith.constant 0 : index
    %c0_6 = arith.constant 0 : index
    %13 = vector.load %arg4[%c0_5, %c0_6] : memref<8x128xbf16, #tpu.memory_space<vmem>>, vector<8x128xbf16>
    tpu.vector_store %arg4[%c0_5, %c0_6], %12 {strides = array<i32>} : memref<8x128xbf16, #tpu.memory_space<vmem>>, vector<8x128xbf16>,
    %14 = arith.negf %11 : vector<8x128xf32>
    %15 = math.exp %14 : vector<8x128xf32>
    %cst_7 = arith.constant 1.000000e+00 : f32
    %16 = vector.broadcast %cst_7 : f32 to vector<8x128xf32>
    %17 = arith.addf %16, %15 : vector<8x128xf32>
    %18 = arith.divf %16, %17 : vector<8x128xf32>
    %19 = tpu.iota {dimensions = array<i32: 0>} : vector<8x1xi32>
    %c8_i32 = arith.constant 8 : i32
    %20 = arith.muli %arg0, %c8_i32 : i32
    %21 = vector.broadcast %20 : i32 to vector<8x1xi32>
    %22 = arith.addi %19, %21 : vector<8x1xi32>
    %23 = arith.sitofp %22 : vector<8x1xi32> to vector<8x1xf32>
    %cst_8 = arith.constant 2.500000e-01 : f32
    %24 = vector.broadcast %cst_8 : f32 to vector<8x1xf32>
    %25 = arith.mulf %23, %24 : vector<8x1xf32>
    %cst_9 = arith.constant 1.250000e-01 : f32
    %26 = vector.broadcast %cst_9 : f32 to vector<8x1xf32>
    %27 = arith.addf %25, %26 : vector<8x1xf32>
    %28 = math.floor %27 : vector<8x1xf32>
    %cst_10 = arith.constant 4.000000e+00 : f32
    %29 = vector.broadcast %cst_10 : f32 to vector<8x1xf32>
    %30 = arith.mulf %28, %29 : vector<8x1xf32>
    %31 = arith.subf %23, %30 : vector<8x1xf32>
    %cst_11 = arith.constant 5.000000e-01 : f32
    %32 = vector.broadcast %cst_11 : f32 to vector<8x1xf32>
    %33 = arith.mulf %31, %32 : vector<8x1xf32>
    %cst_12 = arith.constant 2.500000e-01 : f32
    %34 = vector.broadcast %cst_12 : f32 to vector<8x1xf32>
    %35 = arith.addf %33, %34 : vector<8x1xf32>
    %36 = math.floor %35 : vector<8x1xf32>
    %cst_13 = arith.constant 2.000000e+00 : f32
    %37 = vector.broadcast %cst_13 : f32 to vector<8x1xf32>
    %38 = arith.mulf %36, %37 : vector<8x1xf32>
    %39 = arith.subf %31, %38 : vector<8x1xf32>
    %40 = vector.broadcast %2 : vector<1x128xf32> to vector<8x128xf32>
    %41 = arith.mulf %40, %18 : vector<8x128xf32>
    %42 = arith.mulf %18, %18 : vector<8x128xf32>
    %43 = vector.broadcast %3 : vector<1x128xf32> to vector<8x128xf32>
    %44 = arith.mulf %43, %42 : vector<8x128xf32>
    %45 = arith.addf %41, %44 : vector<8x128xf32>
    %46 = vector.broadcast %39 : vector<8x1xf32> to vector<8x128xf32>
    %47 = vector.broadcast %4 : vector<1x128xf32> to vector<8x128xf32>
    %48 = arith.mulf %46, %47 : vector<8x128xf32>
    %49 = vector.broadcast %36 : vector<8x1xf32> to vector<8x128xf32>
    %50 = vector.broadcast %5 : vector<1x128xf32> to vector<8x128xf32>
    %51 = arith.mulf %49, %50 : vector<8x128xf32>
    %52 = arith.addf %48, %51 : vector<8x128xf32>
    %53 = vector.broadcast %6 : vector<1x128xf32> to vector<8x128xf32>
    %54 = arith.addf %52, %53 : vector<8x128xf32>
    %55 = arith.addf %45, %54 : vector<8x128xf32>
    %c0_14 = arith.constant 0 : index
    %c0_15 = arith.constant 0 : index
    %56 = vector.load %arg5[%c0_14, %c0_15] : memref<8x128xf32, #tpu.memory_space<vmem>>, vector<8x128xf32>
    tpu.vector_store %arg5[%c0_14, %c0_15], %55 {strides = array<i32>} : memref<8x128xf32, #tpu.memory_space<vmem>>, vector<8x128xf32>,
    return
  }
  func.func @transform_0(%arg0: i32) -> (i32, i32) {
    %c0_i32 = arith.constant 0 : i32
    %c0_i32_0 = arith.constant 0 : i32
    return %arg0, %c0_i32 : i32, i32
  }
  func.func @transform_1(%arg0: i32) -> (i32, i32) {
    %c0_i32 = arith.constant 0 : i32
    %c0_i32_0 = arith.constant 0 : i32
    %c0_i32_1 = arith.constant 0 : i32
    return %c0_i32, %c0_i32_0 : i32, i32
  }
  func.func @transform_2(%arg0: i32) -> (i32, i32) {
    %c0_i32 = arith.constant 0 : i32
    %c0_i32_0 = arith.constant 0 : i32
    %c0_i32_1 = arith.constant 0 : i32
    return %c0_i32, %c0_i32_0 : i32, i32
  }
  func.func @transform_3(%arg0: i32) -> (i32, i32) {
    %c0_i32 = arith.constant 0 : i32
    %c0_i32_0 = arith.constant 0 : i32
    return %arg0, %c0_i32 : i32, i32
  }
  func.func @transform_4(%arg0: i32) -> (i32, i32) {
    %c0_i32 = arith.constant 0 : i32
    %c0_i32_0 = arith.constant 0 : i32
    return %arg0, %c0_i32 : i32, i32
  }
}

</mosaic_0001>

<bundles_post_ra>
// kernel: detect_forward.4
= control target key start
LH: loop header
LB: loop body
LE: loop exit
PB: predicated region body
PF: predicated region fallthrough
CT: control target
= control target key end

     0   :  { %vm44_vm0 = vcmask 130048   ;;  %v24_v3 = vlaneseq  ;;  %s410_s1 = inlined_call_operand.vmem [shape: bf16[16,128], index: 1, kind: input, shape index: {}]   ;;  %s411_s0 = inlined_call_operand.vmem [shape: bf16[32,16], index: 0, kind: input, shape index: {}]   ;;  %s412_s2 = inlined_call_operand.vmem [shape: f32[8,128], index: 2, kind: input, shape index: {}]   ;;  %s413_s3 = inlined_call_operand.vmem [shape: bf16[32,128], index: 3, kind: output, shape index: {0}]   ;;  %s414_s4 = inlined_call_operand.vmem [shape: f32[32,128], index: 4, kind: output, shape index: {1}]  }
   0x1   :  { %v304_v0 = vld [vmem:[%s410_s1] sm:$0xff]   ;;  %v306_v2 = vld [vmem:[%s411_s0 + $0x8] sm:$0xff]  }
   0x2   :  { %v305_v1 = vld [vmem:[%s411_s0] sm:$0xff]   ;;  %298 = vmatprep.subr.bf16.mxu0 %v304_v0  ;;  %v357_v4 = vshrl.u32 %v24_v3, 7 }
   0x3   :  { %299 = vmatpush3.bf16.msra.mxu0 %v304_v0  ;;  %300 = vmatprep.mubr.msk.bf16.mxu0 %vm44_vm0, %v305_v1  ;;  %v367_v25 = vld [vmem:[%s412_s2] sm:$0xff] }
   0x4   :  { %v147_v5 = vadd.s32 16, %v357_v4  ;;  %v148_v7 = vadd.s32 24, %v357_v4  ;;  %v146_v8 = vadd.s32 8, %v357_v4  ;;  %v155_v10 = vcvt.s32.f32 %v357_v4 }
   0x5   :  { %v26_v23 = vsub.s32 0, %v357_v4  ;;  %v225_v63 = vsub.s32 3, %v357_v4  ;;  %v233_v0 = vsub.s32 4, %v357_v4 }
   0x6   :  { %301 = vmatmul.mubr.msk.bf16.vlgmr.msra.gmra.mrb[0].mxu0 %vm44_vm0, %v306_v2  ;;  %v157_v6 = vcvt.s32.f32 %v147_v5  ;;  %v158_v11 = vcvt.s32.f32 %v148_v7  ;;  %v156_v12 = vcvt.s32.f32 %v146_v8  ;;  %v159_v14 = vmul.f32 0.0625, %v155_v10 }
   0x7   :  { %v27_v29 = vrot.slane %v367_v25, %v26_v23 }
   0x8   :  { %v161_v9 = vmul.f32 0.0625, %v157_v6  ;;  %v162_v15 = vmul.f32 0.0625, %v158_v11  ;;  %v160_v16 = vmul.f32 0.0625, %v156_v12  ;;  %v163_v18 = vadd.f32 0.03125, %v159_v14 }
   0xa   :  { %v165_v13 = vadd.f32 0.03125, %v161_v9  ;;  %v166_v19 = vadd.f32 0.03125, %v162_v15  ;;  %v164_v20 = vadd.f32 0.03125, %v160_v16  ;;  %v167_v22 = vfloor.f32 %v163_v18 }
   0xc   :  { %v169_v17 = vfloor.f32 %v165_v13  ;;  %v170_v24 = vfloor.f32 %v166_v19  ;;  %v168_v26 = vfloor.f32 %v164_v20  ;;  %v171_v28 = vmul.f32 16.0, %v167_v22 }
   0xd   :  { %v234_v13 = vrot.slane %v367_v25, %v233_v0  ;;  %v213_v19 = vsub.s32 2, %v357_v4  ;;  %v245_v22 = vsub.s32 5, %v357_v4 }
   0xe   :  { %v173_v21 = vmul.f32 16.0, %v169_v17  ;;  %v174_v30 = vmul.f32 16.0, %v170_v24  ;;  %v172_v31 = vmul.f32 16.0, %v168_v26  ;;  %v373_v34 = vsub.f32 %v155_v10, %v171_v28 }
   0xf   :  { %v201_v17 = vsub.s32 1, %v357_v4 }
  0x10   :  { %v369_v27 = vsub.f32 %v157_v6, %v173_v21  ;;  %v375_v37 = vsub.f32 %v158_v11, %v174_v30  ;;  %v176_v40 = vsub.f32 %v156_v12, %v172_v31  ;;  %v179_v46 = vmul.f32 0.25, %v373_v34 }
  0x11   :  { %v226_v12 = vrot.slane %v367_v25, %v225_v63  ;;  %v202_v30 = vrot.slane %v367_v25, %v201_v17  ;;  %v214_v31 = vrot.slane %v367_v25, %v213_v19 }
  0x12   :  { %v181_v33 = vmul.f32 0.25, %v369_v27  ;;  %v182_v50 = vmul.f32 0.25, %v375_v37  ;;  %v180_v53 = vmul.f32 0.25, %v176_v40  ;;  %v183_v54 = vadd.f32 0.125, %v179_v46 }
  0x14   :  { %v185_v44 = vadd.f32 0.125, %v181_v33  ;;  %v186_v55 = vadd.f32 0.125, %v182_v50  ;;  %v184_v57 = vadd.f32 0.125, %v180_v53  ;;  %v187_v58 = vfloor.f32 %v183_v54 }
  0x15   :  { %v246_v33 = vrot.slane %v367_v25, %v245_v22 }
  0x16   :  { %v189_v56 = vfloor.f32 %v185_v44  ;;  %v190_v59 = vfloor.f32 %v186_v55  ;;  %v188_v61 = vfloor.f32 %v184_v57  ;;  %v191_v3 = vmul.f32 4.0, %v187_v58 }
  0x17   :  { %v235_v24 = vmul.f32 %v234_v13, %v187_v58 }
  0x18   :  { %v193_v60 = vmul.f32 4.0, %v189_v56  ;;  %v194_v7 = vmul.f32 4.0, %v190_v59  ;;  %v192_v11 = vmul.f32 4.0, %v188_v61  ;;  %v195_v15 = vsub.f32 %v373_v34, %v191_v3 }
  0x19   :  { %v237_v21 = vmul.f32 %v234_v13, %v189_v56 }
  0x1a   :  { %v197_v9 = vsub.f32 %v369_v27, %v193_v60  ;;  %v198_v16 = vsub.f32 %v375_v37, %v194_v7  ;;  %v196_v18 = vsub.f32 %v176_v40, %v192_v11  ;;  %v227_v23 = vmul.f32 %v226_v12, %v195_v15 }
  0x1b   :  { %v238_v27 = vmul.f32 %v234_v13, %v190_v59 }
  0x1c   :  { %v229_v20 = vmul.f32 %v226_v12, %v197_v9  ;;  %v230_v26 = vmul.f32 %v226_v12, %v198_v16  ;;  %v228_v28 = vmul.f32 %v226_v12, %v196_v18 }
  0xd9   :  { %v302_v32 = vpop.f32.mrb[0].mxu0 }
  0xda   :  { %v94_v35 = vadd.f32 %v302_v32, %v27_v29  ;;  %v85_v36 = vpop.f32.mrb[1].mxu0  ;;  %v241_v32 = vadd.f32 %v237_v21, %v229_v20 }
  0xdb   :  { %v86_v38 = vadd.f32 %v85_v36, %v27_v29  ;;  %v303_v39 = vpop.f32.mrb[2].mxu0 }
  0xdc   :  { %v278_v41 = vmul.f32 -1.442695, %v94_v35  ;;  %v97_v42 = vadd.f32 %v303_v39, %v27_v29  ;;  %v88_v43 = vpop.f32.mrb[3].mxu0  ;;  %v249_v44 = vadd.f32 %v246_v33, %v241_v32 }
  0xdd   :  { %v276_v45 = vmul.f32 -1.442695, %v86_v38  ;;  %v89_v47 = vadd.f32 %v88_v43, %v27_v29  ;;  %v236_v29 = vmul.f32 %v234_v13, %v188_v61 }
  0xde   :  { %307 = vpow2.f32 %v278_v41  ;;  %v292_v48 = vpack.c.bf16 %v97_v42, %v94_v35  ;;  %v279_v49 = vmul.f32 -1.442695, %v97_v42  ;;  %v239_v35 = vadd.f32 %v235_v24, %v227_v23 }
  0xdf   :  { %309 = vpow2.f32 %v276_v45  ;;  %v287_v51 = vpack.c.bf16 %v89_v47, %v86_v38  ;;  %v277_v52 = vmul.f32 -1.442695, %v89_v47  ;;  %v242_v38 = vadd.f32 %v238_v27, %v230_v26 }
  0xe0   :  { %294 = vst [vmem:[%s413_s3 + $0x8] sm:$0xff] %v292_v48   ;;  %311 = vpow2.f32 %v279_v49  ;;  %v240_v40 = vadd.f32 %v236_v29, %v228_v28  ;;  %v247_v48 = vadd.f32 %v246_v33, %v239_v35 }
  0xe1   :  { %288 = vst [vmem:[%s413_s3] sm:$0xff] %v287_v51   ;;  %313 = vpow2.f32 %v277_v52  ;;  %v250_v52 = vadd.f32 %v246_v33, %v242_v38 }
  0xe2   :  { %v248_v56 = vadd.f32 %v246_v33, %v240_v40 }
  0xe8   :  { %v308_v62 = vpop.eup %307 }
  0xe9   :  { %v310_v1 = vpop.eup %309  ;;  %v134_v2 = vadd.f32 1.0, %v308_v62 }
  0xea   :  { %v312_v5 = vpop.eup %311  ;;  %v132_v6 = vadd.f32 1.0, %v310_v1 }
  0xeb   :  { %v314_v8 = vpop.eup %313  ;;  %315 = vrcp.f32 %v134_v2  ;;  %v135_v10 = vadd.f32 1.0, %v312_v5 }
  0xec   :  { %317 = vrcp.f32 %v132_v6  ;;  %v133_v14 = vadd.f32 1.0, %v314_v8 }
  0xed   :  { %319 = vrcp.f32 %v135_v10 }
  0xee   :  { %321 = vrcp.f32 %v133_v14 }
  0xf5   :  { %v316_v34 = vpop.eup %315 }
  0xf6   :  { %v318_v36 = vpop.eup %317  ;;  %v209_v37 = vmul.f32 %v316_v34, %v316_v34  ;;  %v205_v42 = vmul.f32 %v316_v34, %v202_v30 }
  0xf7   :  { %v320_v39 = vpop.eup %319  ;;  %v207_v4 = vmul.f32 %v318_v36, %v318_v36  ;;  %v203_v46 = vmul.f32 %v318_v36, %v202_v30 }
  0xf8   :  { %v322_v41 = vpop.eup %321  ;;  %v217_v43 = vmul.f32 %v214_v31, %v209_v37  ;;  %v210_v45 = vmul.f32 %v320_v39, %v320_v39  ;;  %v206_v51 = vmul.f32 %v320_v39, %v202_v30 }
  0xf9   :  { %v215_v47 = vmul.f32 %v214_v31, %v207_v4  ;;  %v208_v49 = vmul.f32 %v322_v41, %v322_v41  ;;  %v204_v54 = vmul.f32 %v322_v41, %v202_v30 }
  0xfa   :  { %v221_v50 = vadd.f32 %v217_v43, %v205_v42  ;;  %v218_v25 = vmul.f32 %v214_v31, %v210_v45 }
  0xfb   :  { %v219_v53 = vadd.f32 %v215_v47, %v203_v46  ;;  %v216_v55 = vmul.f32 %v214_v31, %v208_v49 }
  0xfc   :  { %v253_v57 = vadd.f32 %v249_v44, %v221_v50  ;;  %v222_v58 = vadd.f32 %v218_v25, %v206_v51 }
  0xfd   :  { %v251_v59 = vadd.f32 %v247_v48, %v219_v53  ;;  %v220_v60 = vadd.f32 %v216_v55, %v204_v54 }
  0xfe   :  { %257 = vst [vmem:[%s414_s4 + $0x10] sm:$0xff] %v253_v57  ;;  %v254_v61 = vadd.f32 %v250_v52, %v222_v58 }
  0xff   :  { %255 = vst [vmem:[%s414_s4] sm:$0xff] %v251_v59  ;;  %v252_v62 = vadd.f32 %v248_v56, %v220_v60 }
 0x100   :  { %258 = vst [vmem:[%s414_s4 + $0x18] sm:$0xff] %v254_v61 }
 0x101   :  { %256 = vst [vmem:[%s414_s4 + $0x8] sm:$0xff] %v252_v62 }

// kernel: detect_forward.3
= control target key start
LH: loop header
LB: loop body
LE: loop exit
PB: predicated region body
PF: predicated region fallthrough
CT: control target
= control target key end

     0   :  { %vm104_vm0 = vcmask 1043456   ;;  %vm79_vm1 = vcmask 64512   ;;  %v35_v10 = vlaneseq  ;;  %s1527_s1 = inlined_call_operand.vmem [shape: bf16[8,128], index: 1, kind: input, shape index: {}]   ;;  %s1528_s0 = inlined_call_operand.vmem [shape: bf16[128,8], index: 0, kind: input, shape index: {}]   ;;  %s1529_s2 = inlined_call_operand.vmem [shape: f32[8,128], index: 2, kind: input, shape index: {}]   ;;  %s1530_s3 = inlined_call_operand.vmem [shape: bf16[128,128], index: 3, kind: output, shape index: {0}]   ;;  %s1531_s4 = inlined_call_operand.vmem [shape: f32[128,128], index: 4, kind: output, shape index: {1}]  }
   0x1   :  { %v34_v0 = vld [vmem:[%s1527_s1] sm:$0xf]  ;;  %v924_v4 = vld [vmem:[%s1528_s0 + $0x8] sm:$0xff]   ;;  %v926_v6 = vld [vmem:[%s1528_s0 + $0x10] sm:$0xff]  }
   0x2   :  { %920 = vmatprep.subr.msk.bf16.mxu0 %vm104_vm0, %v34_v0  ;;  %921 = vmatprep.subr.msk.bf16.mxu1 %vm104_vm0, %v34_v0  ;;  %v106_v1 = vsel %vm104_vm0, %v34_v0, 0  ;;  %v922_v2 = vld [vmem:[%s1528_s0] sm:$0xff]   ;;  %v925_v5 = vld [vmem:[%s1528_s0 + $0x28] sm:$0xff]   ;;  %v927_v7 = vld [vmem:[%s1528_s0 + $0x30] sm:$0xff]   ;;  %v1054_v11 = vshrl.u32 %v35_v10, 7 }
   0x3   :  { %901 = vmatpush3.bf16.msra.mxu0 %v106_v1  ;;  %919 = vmatpush3.bf16.msra.mxu1 %v106_v1  ;;  %v923_v3 = vld [vmem:[%s1528_s0 + $0x20] sm:$0xff]   ;;  %v928_v8 = vld [vmem:[%s1528_s0 + $0x18] sm:$0xff]  }
   0x4   :  { %902 = vmatprep.mubr.msk.bf16.mxu0 %vm79_vm1, %v922_v2  ;;  %910 = vmatprep.mubr.msk.bf16.mxu1 %vm79_vm1, %v923_v3  ;;  %v929_v9 = vld [vmem:[%s1528_s0 + $0x38] sm:$0xff]   ;;  %v384_v12 = vadd.s32 16, %v1054_v11  ;;  %v392_v13 = vadd.s32 80, %v1054_v11  ;;  %v416_v16 = vcvt.s32.f32 %v1054_v11  ;;  %v390_v17 = vadd.s32 64, %v1054_v11 }
   0x5   :  { %v385_v18 = vadd.s32 24, %v1054_v11  ;;  %v1062_v24 = vadd.s32 88, %v1054_v11  ;;  %v1065_v25 = vadd.s32 8, %v1054_v11  ;;  %v1068_v27 = vadd.s32 72, %v1054_v11 }
   0x6   :  { %903 = vmatmul.mubr.msk.bf16.vlgmr.msra.gmra.mrb[0].mxu0 %vm79_vm1, %v924_v4  ;;  %911 = vmatmul.mubr.msk.bf16.vlgmr.msra.gmra.mrb[0].mxu1 %vm79_vm1, %v925_v5  ;;  %v418_v14 = vcvt.s32.f32 %v384_v12  ;;  %v426_v15 = vcvt.s32.f32 %v392_v13  ;;  %v432_v21 = vmul.f32 0.015625, %v416_v16  ;;  %v424_v22 = vcvt.s32.f32 %v390_v17 }
   0x7   :  { %906 = vmatprep.mubr.msk.bf16.mxu0 %vm79_vm1, %v926_v6  ;;  %914 = vmatprep.mubr.msk.bf16.mxu1 %vm79_vm1, %v927_v7  ;;  %v419_v23 = vcvt.s32.f32 %v385_v18  ;;  %v427_v32 = vcvt.s32.f32 %v1062_v24  ;;  %v417_v33 = vcvt.s32.f32 %v1065_v25  ;;  %v425_v35 = vcvt.s32.f32 %v1068_v27  ;;  %v1116_v18 = vld [vmem:[%s1529_s2] sm:$0xff] }
   0x8   :  { %v434_v19 = vmul.f32 0.015625, %v418_v14  ;;  %v442_v20 = vmul.f32 0.015625, %v426_v15  ;;  %v448_v29 = vadd.f32 0.0078125, %v432_v21  ;;  %v440_v30 = vmul.f32 0.015625, %v424_v22 }
   0x9   :  { %v435_v31 = vmul.f32 0.015625, %v419_v23  ;;  %v443_v40 = vmul.f32 0.015625, %v427_v32  ;;  %v433_v41 = vmul.f32 0.015625, %v417_v33  ;;  %v441_v43 = vmul.f32 0.015625, %v425_v35 }
   0xa   :  { %v450_v26 = vadd.f32 0.0078125, %v434_v19  ;;  %v458_v28 = vadd.f32 0.0078125, %v442_v20  ;;  %v464_v37 = vfloor.f32 %v448_v29  ;;  %v456_v38 = vadd.f32 0.0078125, %v440_v30 }
   0xb   :  { %v451_v39 = vadd.f32 0.0078125, %v435_v31  ;;  %v1074_v47 = vadd.s32 48, %v1054_v11  ;;  %v1077_v48 = vadd.s32 112, %v1054_v11  ;;  %v459_v50 = vadd.f32 0.0078125, %v443_v40 }
   0xc   :  { %v466_v34 = vfloor.f32 %v450_v26  ;;  %v474_v36 = vfloor.f32 %v458_v28  ;;  %v480_v45 = vmul.f32 64.0, %v464_v37  ;;  %v472_v46 = vfloor.f32 %v456_v38 }
   0xd   :  { %v467_v49 = vfloor.f32 %v451_v39  ;;  %v449_v51 = vadd.f32 0.0078125, %v433_v41  ;;  %v457_v53 = vadd.f32 0.0078125, %v441_v43  ;;  %v422_v57 = vcvt.s32.f32 %v1074_v47 }
   0xe   :  { %907 = vmatmul.mubr.msk.bf16.gmra.mrb[4].mxu0 %vm79_vm1, %v928_v8  ;;  %915 = vmatmul.mubr.msk.bf16.gmra.mrb[4].mxu1 %vm79_vm1, %v929_v9  ;;  %v482_v42 = vmul.f32 64.0, %v466_v34  ;;  %v490_v44 = vmul.f32 64.0, %v474_v36  ;;  %v1083_v55 = vsub.f32 %v416_v16, %v480_v45  ;;  %v488_v56 = vmul.f32 64.0, %v472_v46 }
   0xf   :  { %v430_v58 = vcvt.s32.f32 %v1077_v48  ;;  %v483_v59 = vmul.f32 64.0, %v467_v49  ;;  %v475_v60 = vfloor.f32 %v459_v50  ;;  %v465_v61 = vfloor.f32 %v449_v51 }
  0x10   :  { %v1079_v52 = vsub.f32 %v418_v14, %v482_v42  ;;  %v1081_v54 = vsub.f32 %v426_v15, %v490_v44  ;;  %v1088_v62 = vadd.s32 32, %v1054_v11  ;;  %v473_v0 = vfloor.f32 %v457_v53 }
  0x11   :  { %v512_v2 = vmul.f32 0.125, %v1083_v55  ;;  %v1094_v3 = vadd.s32 96, %v1054_v11  ;;  %v1096_v4 = vsub.f32 %v424_v22, %v488_v56  ;;  %v438_v5 = vmul.f32 0.015625, %v422_v57 }
  0x12   :  { %v514_v63 = vmul.f32 0.125, %v1079_v52  ;;  %v522_v1 = vmul.f32 0.125, %v1081_v54  ;;  %v446_v6 = vmul.f32 0.015625, %v430_v58  ;;  %v1102_v7 = vsub.f32 %v419_v23, %v483_v59 }
  0x13   :  { %v491_v8 = vmul.f32 64.0, %v475_v60  ;;  %v481_v9 = vmul.f32 64.0, %v465_v61  ;;  %v420_v10 = vcvt.s32.f32 %v1088_v62  ;;  %v489_v13 = vmul.f32 64.0, %v473_v0 }
  0x14   :  { %v1105_v12 = vadd.f32 0.0625, %v514_v63  ;;  %v37_v14 = vsub.s32 0, %v1054_v11  ;;  %v1108_v15 = vadd.f32 0.0625, %v522_v1  ;;  %v1110_v16 = vadd.f32 0.0625, %v512_v2 }
  0x15   :  { %v428_v17 = vcvt.s32.f32 %v1094_v3  ;;  %v520_v19 = vmul.f32 0.125, %v1096_v4  ;;  %v454_v20 = vadd.f32 0.0078125, %v438_v5  ;;  %v462_v21 = vadd.f32 0.0078125, %v446_v6 }
  0x16   :  { %v1120_v22 = vadd.s32 56, %v1054_v11  ;;  %v515_v23 = vmul.f32 0.125, %v1102_v7  ;;  %v1123_v24 = vsub.f32 %v427_v32, %v491_v8  ;;  %v1125_v25 = vsub.f32 %v417_v33, %v481_v9 }
  0x17   :  { %v436_v26 = vmul.f32 0.015625, %v420_v10  ;;  %v546_v27 = vfloor.f32 %v1105_v12  ;;  %v594_v28 = vsub.s32 1, %v1054_v11  ;;  %v1131_v29 = vsub.f32 %v425_v35, %v489_v13 }
  0x18   :  { %v1134_v30 = vrot.slane %v1116_v18, %v37_v14  ;;  %v554_v31 = vfloor.f32 %v1108_v15  ;;  %v544_v34 = vfloor.f32 %v1110_v16  ;;  %v444_v32 = vmul.f32 0.015625, %v428_v17 }
  0x19   :  { %v1140_v33 = vadd.f32 0.0625, %v520_v19  ;;  %v470_v36 = vfloor.f32 %v454_v20  ;;  %v478_v37 = vfloor.f32 %v462_v21  ;;  %v423_v38 = vcvt.s32.f32 %v1120_v22 }
  0x1a   :  { %v1143_v39 = vadd.f32 0.0625, %v515_v23  ;;  %v523_v35 = vmul.f32 0.125, %v1123_v24  ;;  %v513_v40 = vmul.f32 0.125, %v1125_v25  ;;  %v452_v41 = vadd.f32 0.0078125, %v436_v26 }
  0x1b   :  { %v562_v42 = vmul.f32 8.0, %v546_v27  ;;  %v1148_v43 = vrot.slane %v1116_v18, %v594_v28  ;;  %v666_v44 = vsub.s32 3, %v1054_v11  ;;  %v521_v45 = vmul.f32 0.125, %v1131_v29 }
  0x1c   :  { %v686_v46 = vsub.s32 4, %v1054_v11  ;;  %v570_v49 = vmul.f32 8.0, %v554_v31  ;;  %v560_v50 = vmul.f32 8.0, %v544_v34  ;;  %v460_v51 = vadd.f32 0.0078125, %v444_v32 }
  0x1d   :  { %v552_v53 = vfloor.f32 %v1140_v33  ;;  %v486_v56 = vmul.f32 64.0, %v470_v36  ;;  %v494_v59 = vmul.f32 64.0, %v478_v37  ;;  %v439_v60 = vmul.f32 0.015625, %v423_v38 }
  0x1e   :  { %v547_v61 = vfloor.f32 %v1143_v39  ;;  %v539_v63 = vadd.f32 0.0625, %v523_v35  ;;  %v529_v0 = vadd.f32 0.0625, %v513_v40  ;;  %v468_v1 = vfloor.f32 %v452_v41 }
  0x1f   :  { %v578_v2 = vsub.f32 %v1079_v52, %v562_v42  ;;  %v630_v5 = vsub.s32 2, %v1054_v11  ;;  %v1160_v6 = vrot.slane %v1116_v18, %v666_v44  ;;  %v1162_v8 = vadd.f32 0.0625, %v521_v45 }
  0x20   :  { %v1165_v9 = vrot.slane %v1116_v18, %v686_v46  ;;  %v586_v12 = vsub.f32 %v1081_v54, %v570_v49  ;;  %v576_v13 = vsub.f32 %v1083_v55, %v560_v50  ;;  %v476_v14 = vfloor.f32 %v460_v51 }
  0x21   :  { %v568_v15 = vmul.f32 8.0, %v552_v53  ;;  %v1171_v16 = vsub.f32 %v422_v57, %v486_v56  ;;  %v1175_v52 = vsub.f32 %v430_v58, %v494_v59  ;;  %v455_v19 = vadd.f32 0.0078125, %v439_v60 }
  0x22   :  { %v555_v20 = vfloor.f32 %v539_v63  ;;  %v545_v21 = vfloor.f32 %v529_v0  ;;  %v484_v23 = vmul.f32 64.0, %v468_v1  ;;  %v1178_v26 = vadd.s32 120, %v1054_v11 }
  0x23   :  { %v1181_v54 = vrot.slane %v1116_v18, %v630_v5  ;;  %v670_v55 = vmul.f32 %v1160_v6, %v578_v2  ;;  %v563_v28 = vmul.f32 8.0, %v547_v61  ;;  %v553_v47 = vfloor.f32 %v1162_v8 }
  0x24   :  { %v690_v57 = vmul.f32 %v1165_v9, %v546_v27  ;;  %v722_v48 = vsub.s32 5, %v1054_v11  ;;  %v492_v58 = vmul.f32 64.0, %v476_v14  ;;  %v1188_v32 = vadd.s32 40, %v1054_v11 }
  0x25   :  { %v678_v33 = vmul.f32 %v1160_v6, %v586_v12  ;;  %v518_v36 = vmul.f32 0.125, %v1171_v16  ;;  %v526_v37 = vmul.f32 0.125, %v1175_v52  ;;  %v471_v39 = vfloor.f32 %v455_v19 }
  0x26   :  { %v571_v35 = vmul.f32 8.0, %v555_v20  ;;  %v561_v40 = vmul.f32 8.0, %v545_v21  ;;  %v1195_v41 = vsub.f32 %v420_v10, %v484_v23  ;;  %v431_v27 = vcvt.s32.f32 %v1178_v26 }
  0x27   :  { %v698_v42 = vmul.f32 %v1165_v9, %v554_v31  ;;  %v668_v44 = vmul.f32 %v1160_v6, %v576_v13  ;;  %v584_v45 = vsub.f32 %v1096_v4, %v568_v15  ;;  %v569_v46 = vmul.f32 8.0, %v553_v47 }
  0x28   :  { %v688_v49 = vmul.f32 %v1165_v9, %v544_v34  ;;  %v579_v50 = vsub.f32 %v1102_v7, %v563_v28  ;;  %v1205_v51 = vsub.f32 %v428_v17, %v492_v58  ;;  %v421_v62 = vcvt.s32.f32 %v1188_v32 }
  0x29   :  { %v706_v10 = vadd.f32 %v690_v57, %v670_v55  ;;  %v534_v56 = vadd.f32 0.0625, %v518_v36  ;;  %v542_v59 = vadd.f32 0.0625, %v526_v37  ;;  %v487_v60 = vmul.f32 64.0, %v471_v39 }
  0x2a   :  { %v587_v31 = vsub.f32 %v1123_v24, %v571_v35  ;;  %v577_v63 = vsub.f32 %v1125_v25, %v561_v40  ;;  %v516_v4 = vmul.f32 0.125, %v1195_v41  ;;  %v447_v34 = vmul.f32 0.015625, %v431_v27 }
  0x2b   :  { %v676_v7 = vmul.f32 %v1160_v6, %v584_v45  ;;  %v696_v3 = vmul.f32 %v1165_v9, %v552_v53  ;;  %v691_v17 = vmul.f32 %v1165_v9, %v547_v61  ;;  %v585_v0 = vsub.f32 %v1131_v29, %v569_v46 }
  0x2c   :  { %v671_v1 = vmul.f32 %v1160_v6, %v579_v50  ;;  %v699_v2 = vmul.f32 %v1165_v9, %v555_v20  ;;  %v524_v24 = vmul.f32 0.125, %v1205_v51  ;;  %v437_v25 = vmul.f32 0.015625, %v421_v62 }
  0x2d   :  { %v689_v5 = vmul.f32 %v1165_v9, %v545_v21  ;;  %v550_v8 = vfloor.f32 %v534_v56  ;;  %v558_v12 = vfloor.f32 %v542_v59  ;;  %v1225_v53 = vsub.f32 %v423_v38, %v487_v60 }
  0x2e   :  { %v679_v61 = vmul.f32 %v1160_v6, %v587_v31  ;;  %v669_v29 = vmul.f32 %v1160_v6, %v577_v63  ;;  %v532_v13 = vadd.f32 0.0625, %v516_v4  ;;  %v463_v14 = vadd.f32 0.0078125, %v447_v34 }
  0x2f   :  { %v1230_v15 = vrot.slane %v1116_v18, %v722_v48  ;;  %v714_v19 = vadd.f32 %v698_v42, %v678_v33  ;;  %v677_v20 = vmul.f32 %v1160_v6, %v585_v0  ;;  %v697_v21 = vmul.f32 %v1165_v9, %v553_v47 }
  0x30   :  { %v704_v23 = vadd.f32 %v688_v49, %v668_v44  ;;  %v712_v55 = vadd.f32 %v696_v3, %v676_v7  ;;  %v540_v28 = vadd.f32 0.0625, %v524_v24  ;;  %v453_v22 = vadd.f32 0.0078125, %v437_v25 }
  0x31   :  { %v707_v38 = vadd.f32 %v691_v17, %v671_v1  ;;  %v566_v57 = vmul.f32 8.0, %v550_v8  ;;  %v574_v58 = vmul.f32 8.0, %v558_v12  ;;  %v519_v36 = vmul.f32 0.125, %v1225_v53 }
  0x32   :  { %v715_v37 = vadd.f32 %v699_v2, %v679_v61  ;;  %v705_v39 = vadd.f32 %v689_v5, %v669_v29  ;;  %v548_v35 = vfloor.f32 %v532_v13  ;;  %v479_v40 = vfloor.f32 %v463_v14 }
  0x33   :  { %v1236_v18 = vadd.f32 %v1230_v15, %v706_v10  ;;  %v1239_v48 = vadd.f32 %v1230_v15, %v714_v19  ;;  %v713_v47 = vadd.f32 %v697_v21, %v677_v20  ;;  %v1242_v33 = vadd.s32 104, %v1054_v11 }
  0x34   :  { %v1245_v42 = vadd.f32 %v1230_v15, %v704_v23  ;;  %v1248_v44 = vadd.f32 %v1230_v15, %v712_v55  ;;  %v556_v45 = vfloor.f32 %v540_v28  ;;  %v469_v46 = vfloor.f32 %v453_v22 }
  0x35   :  { %v1251_v49 = vadd.f32 %v1230_v15, %v707_v38  ;;  %v582_v50 = vsub.f32 %v1171_v16, %v566_v57  ;;  %v590_v10 = vsub.f32 %v1175_v52, %v574_v58  ;;  %v1255_v56 = vadd.f32 0.0625, %v519_v36 }
  0x36   :  { %v1258_v11 = vadd.f32 %v1230_v15, %v715_v37  ;;  %v1261_v59 = vadd.f32 %v1230_v15, %v705_v39  ;;  %v1263_v60 = vmul.f32 8.0, %v548_v35  ;;  %v495_v31 = vmul.f32 64.0, %v479_v40 }
  0x37   :  { %v1266_v63 = vadd.f32 %v1230_v15, %v713_v47  ;;  %v694_v4 = vmul.f32 %v1165_v9, %v550_v8  ;;  %v1270_v16 = vmul.f32 %v1165_v9, %v558_v12  ;;  %v429_v52 = vcvt.s32.f32 %v1242_v33 }
  0x38   :  { %v1274_v7 = vmul.f32 %v1165_v9, %v548_v35  ;;  %v1276_v3 = vmul.f32 8.0, %v556_v45  ;;  %v1279_v17 = vmul.f32 %v1165_v9, %v556_v45  ;;  %v485_v0 = vmul.f32 64.0, %v469_v46 }
  0x39   :  { %v674_v25 = vmul.f32 %v1160_v6, %v582_v50  ;;  %v1284_v5 = vmul.f32 %v1160_v6, %v590_v10  ;;  %v551_v8 = vfloor.f32 %v1255_v56  ;;  %v580_v14 = vsub.f32 %v1195_v41, %v1263_v60 }
  0x3a   :  { %v1293_v19 = vsub.f32 %v431_v27, %v495_v31  ;;  %v445_v22 = vmul.f32 0.015625, %v429_v52  ;;  %v588_v50 = vsub.f32 %v1205_v51, %v1276_v3 }
  0x3b   :  { %v1313_v31 = vadd.f32 %v694_v4, %v674_v25 }
  0x3d   :  { %v1379_v56 = vadd.f32 %v1230_v15, %v1313_v31 }
  0xd9   :  { %v904_v34 = vpop.f32.mrb[0].mxu0  ;;  %v912_v2 = vpop.f32.mrb[0].mxu1 }
  0xda   :  { %v151_v1 = vadd.f32 %v904_v34, %v1134_v30  ;;  %v142_v24 = vpop.f32.mrb[1].mxu0  ;;  %v183_v12 = vadd.f32 %v912_v2, %v1134_v30  ;;  %v174_v29 = vpop.f32.mrb[1].mxu1  ;;  %v1317_v34 = vmul.f32 8.0, %v551_v8 }
  0xdb   :  { %v143_v61 = vadd.f32 %v142_v24, %v1134_v30  ;;  %v905_v13 = vpop.f32.mrb[2].mxu0  ;;  %v175_v21 = vadd.f32 %v174_v29, %v1134_v30  ;;  %v913_v55 = vpop.f32.mrb[2].mxu1 }
  0xdc   :  { %v814_v20 = vmul.f32 -1.442695, %v151_v1  ;;  %v154_v23 = vadd.f32 %v905_v13, %v1134_v30  ;;  %v145_v28 = vpop.f32.mrb[3].mxu0  ;;  %v822_v38 = vmul.f32 -1.442695, %v183_v12  ;;  %v186_v58 = vadd.f32 %v913_v55, %v1134_v30  ;;  %v177_v37 = vpop.f32.mrb[3].mxu1 }
  0xdd   :  { %v812_v57 = vmul.f32 -1.442695, %v143_v61  ;;  %v146_v36 = vadd.f32 %v145_v28, %v1134_v30  ;;  %v820_v26 = vmul.f32 -1.442695, %v175_v21  ;;  %v178_v46 = vadd.f32 %v177_v37, %v1134_v30 }
  0xde   :  { %930 = vpow2.f32 %v814_v20  ;;  %v852_v27 = vpack.c.bf16 %v154_v23, %v151_v1  ;;  %v815_v39 = vmul.f32 -1.442695, %v154_v23  ;;  %v872_v35 = vpack.c.bf16 %v186_v58, %v183_v12 }
  0xdf   :  { %932 = vpow2.f32 %v822_v38  ;;  %v823_v40 = vmul.f32 -1.442695, %v186_v58  ;;  %v847_v47 = vpack.c.bf16 %v146_v36, %v143_v61  ;;  %v813_v45 = vmul.f32 -1.442695, %v146_v36 }
  0xe0   :  { %934 = vpow2.f32 %v812_v57  ;;  %884 = vst [vmem:[%s1530_s3 + $0x8] sm:$0xff] %v852_v27   ;;  %888 = vst [vmem:[%s1530_s3 + $0x28] sm:$0xff] %v872_v35   ;;  %v1321_v1 = vsub.f32 %v421_v62, %v485_v0  ;;  %v867_v51 = vpack.c.bf16 %v178_v46, %v175_v21  ;;  %v821_v3 = vmul.f32 -1.442695, %v178_v46 }
  0xe1   :  { %936 = vpow2.f32 %v820_v26  ;;  %848 = vst [vmem:[%s1530_s3] sm:$0xff] %v847_v47   ;;  %v908_v10 = vpop.f32.mrb[4].mxu0  ;;  %v916_v24 = vpop.f32.mrb[4].mxu1  ;;  %v461_v13 = vadd.f32 0.0078125, %v445_v22  ;;  %v527_v37 = vmul.f32 0.125, %v1293_v19  ;;  %v583_v46 = vsub.f32 %v1225_v53, %v1317_v34 }
  0xe2   :  { %938 = vpow2.f32 %v815_v39  ;;  %v167_v2 = vadd.f32 %v908_v10, %v1134_v30  ;;  %v158_v12 = vpop.f32.mrb[5].mxu0  ;;  %v199_v61 = vadd.f32 %v916_v24, %v1134_v30  ;;  %v190_v25 = vpop.f32.mrb[5].mxu1  ;;  %887 = vst [vmem:[%s1530_s3 + $0x20] sm:$0xff] %v867_v51   ;;  %v672_v39 = vmul.f32 %v1160_v6, %v580_v14 }
  0xe3   :  { %940 = vpow2.f32 %v823_v40  ;;  %v159_v4 = vadd.f32 %v158_v12, %v1134_v30  ;;  %v909_v29 = vpop.f32.mrb[6].mxu0  ;;  %v191_v62 = vadd.f32 %v190_v25, %v1134_v30  ;;  %v917_v20 = vpop.f32.mrb[6].mxu1  ;;  %v517_v35 = vmul.f32 0.125, %v1321_v1 }
  0xe4   :  { %942 = vpow2.f32 %v813_v45  ;;  %v818_v32 = vmul.f32 -1.442695, %v167_v2  ;;  %v170_v0 = vadd.f32 %v909_v29, %v1134_v30  ;;  %v161_v21 = vpop.f32.mrb[7].mxu0  ;;  %v826_v23 = vmul.f32 -1.442695, %v199_v61  ;;  %v193_v38 = vpop.f32.mrb[7].mxu1 }
  0xe5   :  { %944 = vpow2.f32 %v821_v3  ;;  %v816_v55 = vmul.f32 -1.442695, %v159_v4  ;;  %v1332_v28 = vadd.f32 %v917_v20, %v1134_v30  ;;  %v824_v22 = vmul.f32 -1.442695, %v191_v62 }
  0xe6   :  { %946 = vpow2.f32 %v818_v32  ;;  %v862_v57 = vpack.c.bf16 %v170_v0, %v167_v2  ;;  %v819_v58 = vmul.f32 -1.442695, %v170_v0  ;;  %v1337_v26 = vadd.f32 %v161_v21, %v1134_v30 }
  0xe7   :  { %948 = vpow2.f32 %v826_v23  ;;  %v882_v36 = vpack.c.bf16 %v1332_v28, %v199_v61  ;;  %v1348_v40 = vadd.f32 %v193_v38, %v1134_v30  ;;  %v477_v51 = vfloor.f32 %v461_v13 }
  0xe8   :  { %v931_v27 = vpop.eup %930  ;;  %950 = vpow2.f32 %v816_v55  ;;  %886 = vst [vmem:[%s1530_s3 + $0x18] sm:$0xff] %v862_v57   ;;  %v857_v41 = vpack.c.bf16 %v1337_v26, %v159_v4  ;;  %v680_v2 = vmul.f32 %v1160_v6, %v588_v50  ;;  %v1358_v24 = vadd.f32 0.0625, %v527_v37 }
  0xe9   :  { %v933_v47 = vpop.eup %932  ;;  %v335_v45 = vadd.f32 1.0, %v931_v27  ;;  %952 = vpow2.f32 %v824_v22  ;;  %890 = vst [vmem:[%s1530_s3 + $0x38] sm:$0xff] %v882_v36   ;;  %v877_v10 = vpack.c.bf16 %v1348_v40, %v191_v62  ;;  %v718_v12 = vadd.f32 %v1270_v16, %v1284_v5 }
  0xea   :  { %v935_v60 = vpop.eup %934  ;;  %v343_v14 = vadd.f32 1.0, %v933_v47  ;;  %954 = vpow2.f32 %v819_v58  ;;  %885 = vst [vmem:[%s1530_s3 + $0x10] sm:$0xff] %v857_v41   ;;  %v1365_v61 = vadd.f32 0.0625, %v517_v35  ;;  %v675_v25 = vmul.f32 %v1160_v6, %v583_v46 }
  0xeb   :  { %v937_v30 = vpop.eup %936  ;;  %956 = vrcp.f32 %v335_v45  ;;  %v333_v3 = vadd.f32 1.0, %v935_v60  ;;  %889 = vst [vmem:[%s1530_s3 + $0x30] sm:$0xff] %v877_v10   ;;  %v695_v29 = vmul.f32 %v1165_v9, %v551_v8  ;;  %v708_v16 = vadd.f32 %v1274_v7, %v672_v39 }
  0xec   :  { %v939_v53 = vpop.eup %938  ;;  %958 = vrcp.f32 %v343_v14  ;;  %v341_v34 = vadd.f32 1.0, %v937_v30  ;;  %v493_v5 = vmul.f32 64.0, %v477_v51  ;;  %v716_v20 = vadd.f32 %v1279_v17, %v680_v2 }
  0xed   :  { %v941_v4 = vpop.eup %940  ;;  %960 = vrcp.f32 %v333_v3  ;;  %v336_v50 = vadd.f32 1.0, %v939_v53  ;;  %v559_v21 = vfloor.f32 %v1358_v24  ;;  %v549_v8 = vfloor.f32 %v1365_v61 }
  0xee   :  { %v943_v13 = vpop.eup %942  ;;  %962 = vrcp.f32 %v341_v34  ;;  %v344_v32 = vadd.f32 1.0, %v941_v4  ;;  %v1383_v22 = vadd.f32 %v1230_v15, %v718_v12  ;;  %v711_v57 = vadd.f32 %v695_v29, %v675_v25 }
  0xef   :  { %v945_v62 = vpop.eup %944  ;;  %964 = vrcp.f32 %v336_v50  ;;  %v334_v0 = vadd.f32 1.0, %v943_v13  ;;  %v1386_v36 = vadd.f32 %v1230_v15, %v708_v16  ;;  %v1390_v37 = vsub.f32 %v429_v52, %v493_v5 }
  0xf0   :  { %v947_v23 = vpop.eup %946  ;;  %966 = vrcp.f32 %v344_v32  ;;  %v342_v55 = vadd.f32 1.0, %v945_v62  ;;  %v1393_v39 = vadd.f32 %v1230_v15, %v716_v20  ;;  %v1397_v35 = vmul.f32 8.0, %v559_v21 }
  0xf1   :  { %v949_v38 = vpop.eup %948  ;;  %968 = vrcp.f32 %v334_v0  ;;  %v339_v7 = vadd.f32 1.0, %v947_v23  ;;  %v827_v46 = vmul.f32 -1.442695, %v1332_v28  ;;  %v1402_v33 = vmul.f32 8.0, %v549_v8 }
  0xf2   :  { %v951_v58 = vpop.eup %950  ;;  %970 = vrcp.f32 %v342_v55  ;;  %v347_v17 = vadd.f32 1.0, %v949_v38  ;;  %v1405_v60 = vadd.f32 %v1230_v15, %v711_v57  ;;  %v817_v14 = vmul.f32 -1.442695, %v1337_v26 }
  0xf3   :  { %v953_v31 = vpop.eup %952  ;;  %972 = vrcp.f32 %v339_v7  ;;  %v337_v27 = vadd.f32 1.0, %v951_v58  ;;  %v1409_v30 = vmul.f32 -1.442695, %v1348_v40  ;;  %v1412_v28 = vmul.f32 0.125, %v1390_v37 }
  0xf4   :  { %v955_v47 = vpop.eup %954  ;;  %974 = vrcp.f32 %v347_v17  ;;  %v345_v45 = vadd.f32 1.0, %v953_v31 }
  0xf5   :  { %v957_v52 = vpop.eup %956  ;;  %976 = vrcp.f32 %v337_v27  ;;  %v340_v41 = vadd.f32 1.0, %v955_v47 }
  0xf6   :  { %v959_v10 = vpop.eup %958  ;;  %v614_v51 = vmul.f32 %v957_v52, %v957_v52  ;;  %978 = vrcp.f32 %v345_v45  ;;  %v598_v2 = vmul.f32 %v957_v52, %v1148_v43 }
  0xf7   :  { %v961_v3 = vpop.eup %960  ;;  %v606_v53 = vmul.f32 %v959_v10, %v1148_v43  ;;  %v622_v34 = vmul.f32 %v959_v10, %v959_v10  ;;  %980 = vrcp.f32 %v340_v41 }
  0xf8   :  { %v963_v12 = vpop.eup %962  ;;  %v634_v4 = vmul.f32 %v1181_v54, %v614_v51  ;;  %v596_v26 = vmul.f32 %v961_v3, %v1148_v43  ;;  %v612_v50 = vmul.f32 %v961_v3, %v961_v3  ;;  %982 = vpow2.f32 %v827_v46 }
  0xf9   :  { %v965_v25 = vpop.eup %964  ;;  %v642_v40 = vmul.f32 %v1181_v54, %v622_v34  ;;  %v604_v29 = vmul.f32 %v963_v12, %v1148_v43  ;;  %v620_v13 = vmul.f32 %v963_v12, %v963_v12  ;;  %984 = vpow2.f32 %v817_v14 }
  0xfa   :  { %v967_v32 = vpop.eup %966  ;;  %v650_v16 = vadd.f32 %v634_v4, %v598_v2  ;;  %v632_v5 = vmul.f32 %v1181_v54, %v612_v50  ;;  %v599_v62 = vmul.f32 %v965_v25, %v1148_v43  ;;  %v615_v0 = vmul.f32 %v965_v25, %v965_v25 }
  0xfb   :  { %v969_v20 = vpop.eup %968  ;;  %v658_v23 = vadd.f32 %v642_v40, %v606_v53  ;;  %v640_v55 = vmul.f32 %v1181_v54, %v620_v13  ;;  %v607_v38 = vmul.f32 %v967_v32, %v1148_v43  ;;  %v623_v7 = vmul.f32 %v967_v32, %v967_v32 }
  0xfc   :  { %v971_v57 = vpop.eup %970  ;;  %v742_v58 = vadd.f32 %v1236_v18, %v650_v16  ;;  %v648_v17 = vadd.f32 %v632_v5, %v596_v26  ;;  %v635_v31 = vmul.f32 %v1181_v54, %v615_v0  ;;  %v597_v27 = vmul.f32 %v969_v20, %v1148_v43 }
  0xfd   :  { %v973_v47 = vpop.eup %972  ;;  %v750_v45 = vadd.f32 %v1239_v48, %v658_v23  ;;  %v656_v46 = vadd.f32 %v640_v55, %v604_v29  ;;  %v643_v52 = vmul.f32 %v1181_v54, %v623_v7  ;;  %v613_v41 = vmul.f32 %v969_v20, %v969_v20 }
  0xfe   :  { %v975_v14 = vpop.eup %974  ;;  %758 = vst [vmem:[%s1531_s4 + $0x10] sm:$0xff] %v742_v58  ;;  %v740_v10 = vadd.f32 %v1245_v42, %v648_v17  ;;  %v651_v18 = vadd.f32 %v635_v31, %v599_v62  ;;  %v605_v51 = vmul.f32 %v971_v57, %v1148_v43  ;;  %v621_v3 = vmul.f32 %v971_v57, %v971_v57 }
  0xff   :  { %v977_v2 = vpop.eup %976  ;;  %766 = vst [vmem:[%s1531_s4 + $0x50] sm:$0xff] %v750_v45  ;;  %v748_v48 = vadd.f32 %v1248_v44, %v656_v46  ;;  %v659_v53 = vadd.f32 %v643_v52, %v607_v38  ;;  %v633_v34 = vmul.f32 %v1181_v54, %v613_v41  ;;  %v602_v12 = vmul.f32 %v973_v47, %v1148_v43 }
 0x100   :  { %v979_v4 = vpop.eup %978  ;;  %756 = vst [vmem:[%s1531_s4] sm:$0xff] %v740_v10  ;;  %v743_v42 = vadd.f32 %v1251_v49, %v651_v18  ;;  %v641_v26 = vmul.f32 %v1181_v54, %v621_v3  ;;  %v618_v50 = vmul.f32 %v973_v47, %v973_v47  ;;  %v610_v25 = vmul.f32 %v975_v14, %v1148_v43 }
 0x101   :  { %v981_v40 = vpop.eup %980  ;;  %764 = vst [vmem:[%s1531_s4 + $0x40] sm:$0xff] %v748_v48  ;;  %v751_v44 = vadd.f32 %v1258_v11, %v659_v53  ;;  %v649_v29 = vadd.f32 %v633_v34, %v597_v27  ;;  %v626_v13 = vmul.f32 %v975_v14, %v975_v14  ;;  %v600_v32 = vmul.f32 %v977_v2, %v1148_v43 }
 0x102   :  { %v983_v16 = vpop.eup %982  ;;  %759 = vst [vmem:[%s1531_s4 + $0x18] sm:$0xff] %v743_v42  ;;  %v657_v49 = vadd.f32 %v641_v26, %v605_v51  ;;  %v638_v5 = vmul.f32 %v1181_v54, %v618_v50  ;;  %v616_v62 = vmul.f32 %v977_v2, %v977_v2  ;;  %v608_v0 = vmul.f32 %v979_v4, %v1148_v43 }
 0x103   :  { %v985_v20 = vpop.eup %984  ;;  %767 = vst [vmem:[%s1531_s4 + $0x58] sm:$0xff] %v751_v44  ;;  %v741_v11 = vadd.f32 %v1261_v59, %v649_v29  ;;  %v646_v23 = vmul.f32 %v1181_v54, %v626_v13  ;;  %v624_v55 = vmul.f32 %v979_v4, %v979_v4  ;;  %v603_v38 = vmul.f32 %v981_v40, %v1148_v43 }
 0x104   :  { %v749_v7 = vadd.f32 %v1266_v63, %v657_v49  ;;  %v654_v57 = vadd.f32 %v638_v5, %v602_v12  ;;  %v636_v58 = vmul.f32 %v1181_v54, %v616_v62  ;;  %v619_v17 = vmul.f32 %v981_v40, %v981_v40 }
 0x105   :  { %757 = vst [vmem:[%s1531_s4 + $0x8] sm:$0xff] %v741_v11  ;;  %v662_v31 = vadd.f32 %v646_v23, %v610_v25  ;;  %v644_v27 = vmul.f32 %v1181_v54, %v624_v55  ;;  %v348_v47 = vadd.f32 1.0, %v983_v16  ;;  %v338_v59 = vadd.f32 1.0, %v985_v20 }
 0x106   :  { %765 = vst [vmem:[%s1531_s4 + $0x48] sm:$0xff] %v749_v7  ;;  %v746_v45 = vadd.f32 %v1379_v56, %v654_v57  ;;  %v652_v63 = vadd.f32 %v636_v58, %v600_v32  ;;  %v639_v46 = vmul.f32 %v1181_v54, %v619_v17  ;;  %986 = vpow2.f32 %v1409_v30 }
 0x107   :  { %v754_v52 = vadd.f32 %v1383_v22, %v662_v31  ;;  %v660_v41 = vadd.f32 %v644_v27, %v608_v0  ;;  %988 = vrcp.f32 %v348_v47  ;;  %v591_v14 = vsub.f32 %v1293_v19, %v1397_v35 }
 0x108   :  { %762 = vst [vmem:[%s1531_s4 + $0x30] sm:$0xff] %v746_v45  ;;  %v744_v10 = vadd.f32 %v1386_v36, %v652_v63  ;;  %v655_v18 = vadd.f32 %v639_v46, %v603_v38  ;;  %990 = vrcp.f32 %v338_v59  ;;  %v541_v56 = vadd.f32 0.0625, %v1412_v28 }
 0x109   :  { %770 = vst [vmem:[%s1531_s4 + $0x70] sm:$0xff] %v754_v52  ;;  %v752_v22 = vadd.f32 %v1393_v39, %v660_v41  ;;  %v581_v30 = vsub.f32 %v1321_v1, %v1402_v33  ;;  %v683_v36 = vmul.f32 %v1160_v6, %v591_v14  ;;  %v703_v1 = vmul.f32 %v1165_v9, %v559_v21 }
 0x10a   :  { %760 = vst [vmem:[%s1531_s4 + $0x20] sm:$0xff] %v744_v10  ;;  %v747_v19 = vadd.f32 %v1405_v60, %v655_v18  ;;  %v557_v39 = vfloor.f32 %v541_v56  ;;  %v693_v33 = vmul.f32 %v1165_v9, %v549_v8 }
 0x10b   :  { %768 = vst [vmem:[%s1531_s4 + $0x60] sm:$0xff] %v752_v22  ;;  %v673_v35 = vmul.f32 %v1160_v6, %v581_v30  ;;  %v719_v28 = vadd.f32 %v703_v1, %v683_v36 }
 0x10c   :  { %763 = vst [vmem:[%s1531_s4 + $0x38] sm:$0xff] %v747_v19  ;;  %v573_v51 = vmul.f32 8.0, %v557_v39  ;;  %v701_v29 = vmul.f32 %v1165_v9, %v557_v39 }
 0x10d   :  { %v709_v2 = vadd.f32 %v693_v33, %v673_v35  ;;  %v739_v4 = vadd.f32 %v1230_v15, %v719_v28 }
 0x10e   :  { %v589_v61 = vsub.f32 %v1390_v37, %v573_v51 }
 0x10f   :  { %v729_v26 = vadd.f32 %v1230_v15, %v709_v2 }
 0x110   :  { %v987_v60 = vpop.eup %986  ;;  %v681_v44 = vmul.f32 %v1160_v6, %v589_v61 }
 0x111   :  { %v989_v3 = vpop.eup %988  ;;  %v346_v48 = vadd.f32 1.0, %v987_v60 }
 0x112   :  { %v991_v53 = vpop.eup %990  ;;  %v627_v34 = vmul.f32 %v989_v3, %v989_v3  ;;  %v611_v24 = vmul.f32 %v989_v3, %v1148_v43  ;;  %v717_v37 = vadd.f32 %v701_v29, %v681_v44 }
 0x113   :  { %v617_v12 = vmul.f32 %v991_v53, %v991_v53  ;;  %992 = vrcp.f32 %v346_v48  ;;  %v601_v8 = vmul.f32 %v991_v53, %v1148_v43 }
 0x114   :  { %v647_v21 = vmul.f32 %v1181_v54, %v627_v34  ;;  %v737_v6 = vadd.f32 %v1230_v15, %v717_v37 }
 0x115   :  { %v637_v42 = vmul.f32 %v1181_v54, %v617_v12 }
 0x116   :  { %v663_v50 = vadd.f32 %v647_v21, %v611_v24 }
 0x117   :  { %v653_v25 = vadd.f32 %v637_v42, %v601_v8 }
 0x118   :  { %v755_v40 = vadd.f32 %v739_v4, %v663_v50 }
 0x119   :  { %v745_v13 = vadd.f32 %v729_v26, %v653_v25 }
 0x11a   :  { %771 = vst [vmem:[%s1531_s4 + $0x78] sm:$0xff] %v755_v40 }
 0x11b   :  { %761 = vst [vmem:[%s1531_s4 + $0x28] sm:$0xff] %v745_v13 }
 0x11d   :  { %v993_v32 = vpop.eup %992 }
 0x11e   :  { %v625_v16 = vmul.f32 %v993_v32, %v993_v32  ;;  %v609_v49 = vmul.f32 %v993_v32, %v1148_v43 }
 0x120   :  { %v645_v5 = vmul.f32 %v1181_v54, %v625_v16 }
 0x122   :  { %v661_v62 = vadd.f32 %v645_v5, %v609_v49 }
 0x124   :  { %v753_v9 = vadd.f32 %v737_v6, %v661_v62 }
 0x126   :  { %769 = vst [vmem:[%s1531_s4 + $0x68] sm:$0xff] %v753_v9 }

// kernel: detect_forward.5
= control target key start
LH: loop header
LB: loop body
LE: loop exit
PB: predicated region body
PF: predicated region fallthrough
CT: control target
= control target key end

     0   :  { %v168_v0 = vmov 0.0   ;;  %vm169_vm0 = vmmov 0   ;;  %vm39_vm1 = vcmask 261120   ;;  %v23_v4 = vlaneseq  ;;  %s213_s1 = inlined_call_operand.vmem [shape: bf16[32,128], index: 1, kind: input, shape index: {}]   ;;  %s214_s0 = inlined_call_operand.vmem [shape: bf16[8,32], index: 0, kind: input, shape index: {}]   ;;  %s215_s2 = inlined_call_operand.vmem [shape: f32[8,128], index: 2, kind: input, shape index: {}]   ;;  %s216_s3 = inlined_call_operand.vmem [shape: bf16[8,128], index: 3, kind: output, shape index: {0}]   ;;  %s217_s4 = inlined_call_operand.vmem [shape: f32[8,128], index: 4, kind: output, shape index: {1}]  }
   0x1   :  { %152 = vmatprep.subr.bf16.mxu0 %v168_v0  ;;  %v162_v1 = vld [vmem:[%s213_s1] sm:$0xff]   ;;  %156 = vmatprep.mubr.msk.bf16.mxu0 %vm169_vm0, %v168_v0  ;;  %v163_v2 = vld [vmem:[%s213_s1 + $0x8] sm:$0xff]  }
   0x2   :  { %153 = vmatpush3.bf16.msra.mxu0 %v162_v1  ;;  %v18_v3 = vld [vmem:[%s214_s0] sm:$0xf]  ;;  %v24_v5 = vshrl.u32 %v23_v4, 7 }
   0x3   :  { %154 = vmatprep.subr.bf16.mxu0 %v168_v0  ;;  %v17_v11 = vld [vmem:[%s215_s2] sm:$0xff] }
   0x4   :  { %v96_v6 = vcvt.s32.f32 %v24_v5  ;;  %v25_v10 = vsub.s32 0, %v24_v5  ;;  %v121_v27 = vsub.s32 3, %v24_v5  ;;  %v126_v28 = vsub.s32 4, %v24_v5 }
   0x5   :  { %v109_v33 = vsub.s32 1, %v24_v5  ;;  %v115_v34 = vsub.s32 2, %v24_v5  ;;  %v132_v37 = vsub.s32 5, %v24_v5 }
   0x6   :  { %155 = vmatpush3.bf16.msra.mxu0 %v163_v2  ;;  %v97_v7 = vmul.f32 0.25, %v96_v6  ;;  %v26_v13 = vrot.slane %v17_v11, %v25_v10  ;;  %v122_v31 = vrot.slane %v17_v11, %v121_v27  ;;  %v127_v32 = vrot.slane %v17_v11, %v126_v28 }
   0x7   :  { %v110_v38 = vrot.slane %v17_v11, %v109_v33  ;;  %v116_v39 = vrot.slane %v17_v11, %v115_v34  ;;  %v133_v41 = vrot.slane %v17_v11, %v132_v37 }
   0x8   :  { %v98_v8 = vadd.f32 0.125, %v97_v7 }
   0x9   :  { %157 = vmatmul.mubr.msk.bf16.vlgmr.msra.gmra.mrb[0].mxu0 %vm39_vm1, %v18_v3 }
   0xa   :  { %v99_v9 = vfloor.f32 %v98_v8 }
   0xc   :  { %v100_v12 = vmul.f32 4.0, %v99_v9 }
   0xe   :  { %v101_v14 = vsub.f32 %v96_v6, %v100_v12 }
  0x10   :  { %v102_v21 = vmul.f32 0.5, %v101_v14 }
  0x12   :  { %v103_v23 = vadd.f32 0.25, %v102_v21 }
  0x14   :  { %v104_v24 = vfloor.f32 %v103_v23 }
  0x16   :  { %v105_v26 = vmul.f32 2.0, %v104_v24  ;;  %v128_v36 = vmul.f32 %v127_v32, %v104_v24 }
  0x18   :  { %v106_v30 = vsub.f32 %v101_v14, %v105_v26 }
  0x1a   :  { %v123_v35 = vmul.f32 %v122_v31, %v106_v30 }
  0x1c   :  { %v129_v40 = vadd.f32 %v128_v36, %v123_v35 }
  0x1e   :  { %v134_v46 = vadd.f32 %v133_v41, %v129_v40 }
  0xdc   :  { %v77_v15 = vpop.f32.mrb[0].mxu0 }
  0xdd   :  { %v78_v16 = vadd.f32 %v77_v15, %v26_v13  ;;  %v158_v17 = vpop.f32.mrb[1].mxu0 }
  0xde   :  { %v80_v18 = vpop.f32.mrb[2].mxu0 }
  0xdf   :  { %v83_v19 = vpack.c.bf16 %v78_v16, %v78_v16  ;;  %v148_v20 = vmul.f32 -1.442695, %v78_v16  ;;  %v159_v22 = vpop.f32.mrb[3].mxu0 }
  0xe1   :  { %84 = vst [vmem:[%s216_s3] sm:$0xf] %v83_v19  ;;  %164 = vpow2.f32 %v148_v20 }
  0xeb   :  { %v165_v25 = vpop.eup %164 }
  0xec   :  { %v88_v29 = vadd.f32 1.0, %v165_v25 }
  0xee   :  { %166 = vrcp.f32 %v88_v29 }
  0xf8   :  { %v167_v42 = vpop.eup %166 }
  0xf9   :  { %v112_v43 = vmul.f32 %v167_v42, %v167_v42  ;;  %v111_v44 = vmul.f32 %v167_v42, %v110_v38 }
  0xfb   :  { %v117_v45 = vmul.f32 %v116_v39, %v112_v43 }
  0xfd   :  { %v118_v47 = vadd.f32 %v117_v45, %v111_v44 }
  0xff   :  { %v135_v48 = vadd.f32 %v134_v46, %v118_v47 }
 0x101   :  { %136 = vst [vmem:[%s217_s4] sm:$0xff] %v135_v48 }

</bundles_post_ra>
